<compile_context>
chip_gen: v6e
topology: v6e:2x2x1
jax: 0.10.0
libtpu: 0.0.40
codegen_flags: <defaults>
</compile_context>

<pallas_src>
import functools

import jax
import jax.numpy as jnp
from jax.experimental import pallas as pl
from jax.experimental.pallas import tpu as pltpu

HIDDEN = 128            # hidden_size / output_size of make_mlp
LN_EPS = 1e-5           # torch.nn.LayerNorm default
MATMUL_DTYPE = jnp.bfloat16


def node_mlp_kernel(x_ref, w1_ref, b1_ref, w2_ref, b2_ref, w3_ref, b3_ref,
                    g_ref, beta_ref, o_ref, *, matmul_dtype):
    # --- Linear 1 + ReLU ----------------------------------------------------
    # bf16 operands -> single MXU pass; f32 accumulation; bias/ReLU on VPU in f32.
    h = jnp.dot(x_ref[...].astype(matmul_dtype), w1_ref[...],
                preferred_element_type=jnp.float32)
    h = jnp.maximum(h + b1_ref[...], 0.0)

    # --- Linear 2 + ReLU ----------------------------------------------------
    h = jnp.dot(h.astype(matmul_dtype), w2_ref[...],
                preferred_element_type=jnp.float32)
    h = jnp.maximum(h + b2_ref[...], 0.0)

    # --- Linear 3 -----------------------------------------------------------
    h = jnp.dot(h.astype(matmul_dtype), w3_ref[...],
                preferred_element_type=jnp.float32)
    h = h + b3_ref[...]

    # --- LayerNorm over last dim (biased variance, eps inside rsqrt) ---------
    # Reductions -> XLU, rsqrt -> EUP: free filler in this memory-bound regime.
    mean = jnp.mean(h, axis=-1, keepdims=True)
    centered = h - mean
    var = jnp.mean(centered * centered, axis=-1, keepdims=True)
    inv = jax.lax.rsqrt(var + LN_EPS)
    y = centered * inv * g_ref[...] + beta_ref[...]

    o_ref[...] = y.astype(o_ref.dtype)


def _round_up(x, m):
    return (x + m - 1) // m * m


def _choose_tm(n, *, tm_max=2048, lane_mult=256, min_grid=4):
    """Adaptive node tile.

    Big enough to amortize the ~0.35us/step grid overhead, but (a) small N is
    not padded to a huge tile, and (b) the grid keeps >= min_grid steps when N
    allows it so v7x's two TensorCores both get work via the "parallel" axis.
    Multiples of 256 suit the 2x256^2 MXU (v6e/v7x) and 4x128^2 MXU (v5e).
    """
    tm = _round_up(max(1, pl.cdiv(n, min_grid)), lane_mult)
    return min(tm_max, tm, _round_up(n, lane_mult))


@functools.partial(jax.jit,
                   static_argnames=("tm", "out_dtype", "matmul_dtype"))
def node_model_forward(x, params, *, tm=None, out_dtype=jnp.bfloat16,
                       matmul_dtype=MATMUL_DTYPE):
    """Apply NodeModel.forward (i.e. node_mlp(x)) via a fused Pallas kernel.

    x: (N, input_size) float32.  Arbitrary N: the wrapper pads to a multiple
    of the (adaptively chosen) node tile and slices the result back.
    out_dtype defaults to bf16 (halves the dominant output HBM traffic);
    pass jnp.float32 for dtype parity with the PyTorch module.
    """
    w1, b1, w2, b2, w3, b3, gamma, beta = params
    N, D_in = x.shape
    H = w1.shape[1]

    if tm is None:
        tm = _choose_tm(N)

    n_tiles = pl.cdiv(N, tm)
    n_pad = n_tiles * tm
    if n_pad != N:
        x = jnp.pad(x, ((0, n_pad - N), (0, 0)))

    # Cast MXU operands once here (NOT inside the kernel body): single-pass
    # bf16 matmuls; biases / LayerNorm params stay f32.
    w1m = w1.astype(matmul_dtype)
    w2m = w2.astype(matmul_dtype)
    w3m = w3.astype(matmul_dtype)

    full = lambda shape: pl.BlockSpec(shape, lambda i: (0,) * len(shape))

    # Advisory cost hint for XLA's scheduler, with real dtypes / padded sizes.
    w_bytes = jnp.dtype(matmul_dtype).itemsize
    out_bytes = jnp.dtype(out_dtype).itemsize
    flops = 2 * n_pad * (D_in * H + 2 * H * H) + 9 * n_pad * H   # MLP + LN
    bytes_accessed = (n_pad * D_in * x.dtype.itemsize            # x stream
                      + n_pad * H * out_bytes                    # out stream
                      + (D_in * H + 2 * H * H) * w_bytes         # bf16 weights
                      + 5 * H * 4)                               # biases + LN
    cost = pl.CostEstimate(flops=flops, transcendentals=n_pad,
                           bytes_accessed=bytes_accessed)

    kernel = functools.partial(node_mlp_kernel, matmul_dtype=matmul_dtype)

    out = pl.pallas_call(
        kernel,
        out_shape=jax.ShapeDtypeStruct((n_pad, H), out_dtype),
        grid_spec=pltpu.PrefetchScalarGridSpec(
            num_scalar_prefetch=0,
            grid=(n_tiles,),
            in_specs=[
                pl.BlockSpec((tm, D_in), lambda i: (i, 0)),   # x tile (streamed)
                full((D_in, H)),                              # W1 (bf16, resident)
                full((1, H)),                                 # b1 (f32)
                full((H, H)),                                 # W2 (bf16)
                full((1, H)),                                 # b2
                full((H, H)),                                 # W3 (bf16)
                full((1, H)),                                 # b3
                full((1, H)),                                 # LayerNorm gamma
                full((1, H)),                                 # LayerNorm beta
            ],
            out_specs=pl.BlockSpec((tm, H), lambda i: (i, 0)),
        ),
        compiler_params=pltpu.CompilerParams(
            dimension_semantics=("parallel",)),
        cost_estimate=cost,
    )(x, w1m, b1, w2m, b2, w3m, b3, gamma, beta)

    if n_pad != N:
        out = out[:N]
    return out


def init_params(key, input_size, hidden_size=HIDDEN, output_size=HIDDEN):
    """Deterministic synthetic parameters (shapes match make_mlp), f32."""
    ks = jax.random.split(key, 6)

    def linear(kw, kb, fan_in, fan_out):
        bound = 1.0 / jnp.sqrt(fan_in)
        w = jax.random.uniform(kw, (fan_in, fan_out), jnp.float32, -bound, bound)
        b = jax.random.uniform(kb, (1, fan_out), jnp.float32, -bound, bound)
        return w, b

    w1, b1 = linear(ks[0], ks[1], input_size, hidden_size)
    w2, b2 = linear(ks[2], ks[3], hidden_size, hidden_size)
    w3, b3 = linear(ks[4], ks[5], hidden_size, output_size)
    gamma = jnp.ones((1, output_size), jnp.float32)
    beta = jnp.zeros((1, output_size), jnp.float32)
    return (w1, b1, w2, b2, w3, b3, gamma, beta)


def reference_forward(x, params, matmul_dtype=jnp.float32):
    """Pure-JAX reference of the same MLP + LayerNorm (optionally with the
    same bf16 matmul-operand casts as the kernel) for validation."""
    w1, b1, w2, b2, w3, b3, gamma, beta = params
    md = matmul_dtype
    h = jnp.maximum(jnp.dot(x.astype(md), w1.astype(md),
                            preferred_element_type=jnp.float32) + b1, 0.0)
    h = jnp.maximum(jnp.dot(h.astype(md), w2.astype(md),
                            preferred_element_type=jnp.float32) + b2, 0.0)
    h = jnp.dot(h.astype(md), w3.astype(md),
                preferred_element_type=jnp.float32) + b3
    mean = jnp.mean(h, axis=-1, keepdims=True)
    var = jnp.mean((h - mean) ** 2, axis=-1, keepdims=True)
    return (h - mean) * jax.lax.rsqrt(var + LN_EPS) * gamma + beta


if __name__ == "__main__":
    key = jax.random.PRNGKey(0)
    k_x, k_p = jax.random.split(key)

    N = 200           # number of graph nodes (deliberately not a tile multiple)
    INPUT_SIZE = 32   # node feature size (kept as full last-dim block)

    x = jax.random.normal(k_x, (N, INPUT_SIZE), jnp.float32)
    # Unused NodeModel.forward args (interface parity only; not consumed):
    edge_index = jnp.zeros((2, 8), jnp.int32)
    edge_attr = jnp.zeros((8, 4), jnp.float32)
    u = None
    batch = jnp.zeros((N,), jnp.int32)

    params = init_params(k_p, INPUT_SIZE)

    out = node_model_forward(x, params)          # bf16 output by default
    out = jax.block_until_ready(out)

    assert out.shape == (N, HIDDEN)
    assert out.dtype == jnp.bfloat16

    # Validate against a cast-matched pure-JAX reference (same bf16 matmul
    # operands, f32 accumulation); tolerance covers bf16 output rounding.
    ref = reference_forward(x, params, matmul_dtype=MATMUL_DTYPE)
    out_f32 = out.astype(jnp.float32)
    max_err = jnp.max(jnp.abs(out_f32 - ref))
    assert jnp.allclose(out_f32, ref, atol=2e-2, rtol=2e-2), \
        f"mismatch vs reference (max abs err {max_err})"

    print("KERNEL_OK")
</pallas_src>

<mosaic_0001>
module attributes {stable_mosaic.version = 11 : i64} {
  func.func @node_mlp_kernel(%arg0: i32, %arg1: memref<256x32xf32, #tpu.memory_space<vmem>>, %arg2: memref<32x128xbf16, #tpu.memory_space<vmem>>, %arg3: memref<1x128xf32, #tpu.memory_space<vmem>>, %arg4: memref<128x128xbf16, #tpu.memory_space<vmem>>, %arg5: memref<1x128xf32, #tpu.memory_space<vmem>>, %arg6: memref<128x128xbf16, #tpu.memory_space<vmem>>, %arg7: memref<1x128xf32, #tpu.memory_space<vmem>>, %arg8: memref<1x128xf32, #tpu.memory_space<vmem>>, %arg9: memref<1x128xf32, #tpu.memory_space<vmem>>, %arg10: memref<256x128xbf16, #tpu.memory_space<vmem>>) attributes {dimension_semantics = [#tpu.dimension_semantics<parallel>], iteration_bounds = array<i64: 1>, scalar_prefetch = 0 : i64, scratch_operands = 0 : i64, tpu.core_type = #tpu.core_type<tc>, window_params = [{transform_indices = @transform_0, window_bounds = array<i64: 256, 32>}, {pipeline_mode = #tpu.pipeline_mode<synchronous>, transform_indices = @transform_1, window_bounds = array<i64: 32, 128>}, {pipeline_mode = #tpu.pipeline_mode<synchronous>, transform_indices = @transform_2, window_bounds = array<i64: 1, 128>}, {pipeline_mode = #tpu.pipeline_mode<synchronous>, transform_indices = @transform_3, window_bounds = array<i64: 128, 128>}, {pipeline_mode = #tpu.pipeline_mode<synchronous>, transform_indices = @transform_4, window_bounds = array<i64: 1, 128>}, {pipeline_mode = #tpu.pipeline_mode<synchronous>, transform_indices = @transform_5, window_bounds = array<i64: 128, 128>}, {pipeline_mode = #tpu.pipeline_mode<synchronous>, transform_indices = @transform_6, window_bounds = array<i64: 1, 128>}, {pipeline_mode = #tpu.pipeline_mode<synchronous>, transform_indices = @transform_7, window_bounds = array<i64: 1, 128>}, {pipeline_mode = #tpu.pipeline_mode<synchronous>, transform_indices = @transform_8, window_bounds = array<i64: 1, 128>}, {transform_indices = @transform_9, window_bounds = array<i64: 256, 128>}]} {
    %c0 = arith.constant 0 : index
    %c0_0 = arith.constant 0 : index
    %0 = vector.load %arg1[%c0, %c0_0] : memref<256x32xf32, #tpu.memory_space<vmem>>, vector<256x32xf32>
    %1 = arith.truncf %0 : vector<256x32xf32> to vector<256x32xbf16>
    %c0_1 = arith.constant 0 : index
    %c0_2 = arith.constant 0 : index
    %2 = vector.load %arg2[%c0_1, %c0_2] : memref<32x128xbf16, #tpu.memory_space<vmem>>, vector<32x128xbf16>
    %cst = arith.constant dense<0.000000e+00> : vector<256x128xf32>
    %3 = tpu.matmul %1, %2, %cst {dimension_numbers = #tpu.dot_dimension_numbers<[1], [0], [0], [1], [0, 0, 1, 1], [], []>} : vector<256x32xbf16>, vector<32x128xbf16>, vector<256x128xf32> -> vector<256x128xf32>
    %c0_3 = arith.constant 0 : index
    %c0_4 = arith.constant 0 : index
    %4 = vector.load %arg3[%c0_3, %c0_4] : memref<1x128xf32, #tpu.memory_space<vmem>>, vector<1x128xf32>
    %5 = vector.broadcast %4 : vector<1x128xf32> to vector<256x128xf32>
    %6 = arith.addf %3, %5 : vector<256x128xf32>
    %cst_5 = arith.constant 0.000000e+00 : f32
    %7 = vector.broadcast %cst_5 : f32 to vector<256x128xf32>
    %8 = arith.maximumf %6, %7 : vector<256x128xf32>
    %9 = arith.truncf %8 : vector<256x128xf32> to vector<256x128xbf16>
    %c0_6 = arith.constant 0 : index
    %c0_7 = arith.constant 0 : index
    %10 = vector.load %arg4[%c0_6, %c0_7] : memref<128x128xbf16, #tpu.memory_space<vmem>>, vector<128x128xbf16>
    %cst_8 = arith.constant dense<0.000000e+00> : vector<256x128xf32>
    %11 = tpu.matmul %9, %10, %cst_8 {dimension_numbers = #tpu.dot_dimension_numbers<[1], [0], [0], [1], [0, 0, 1, 1], [], []>} : vector<256x128xbf16>, vector<128x128xbf16>, vector<256x128xf32> -> vector<256x128xf32>
    %c0_9 = arith.constant 0 : index
    %c0_10 = arith.constant 0 : index
    %12 = vector.load %arg5[%c0_9, %c0_10] : memref<1x128xf32, #tpu.memory_space<vmem>>, vector<1x128xf32>
    %13 = vector.broadcast %12 : vector<1x128xf32> to vector<256x128xf32>
    %14 = arith.addf %11, %13 : vector<256x128xf32>
    %cst_11 = arith.constant 0.000000e+00 : f32
    %15 = vector.broadcast %cst_11 : f32 to vector<256x128xf32>
    %16 = arith.maximumf %14, %15 : vector<256x128xf32>
    %17 = arith.truncf %16 : vector<256x128xf32> to vector<256x128xbf16>
    %c0_12 = arith.constant 0 : index
    %c0_13 = arith.constant 0 : index
    %18 = vector.load %arg6[%c0_12, %c0_13] : memref<128x128xbf16, #tpu.memory_space<vmem>>, vector<128x128xbf16>
    %cst_14 = arith.constant dense<0.000000e+00> : vector<256x128xf32>
    %19 = tpu.matmul %17, %18, %cst_14 {dimension_numbers = #tpu.dot_dimension_numbers<[1], [0], [0], [1], [0, 0, 1, 1], [], []>} : vector<256x128xbf16>, vector<128x128xbf16>, vector<256x128xf32> -> vector<256x128xf32>
    %c0_15 = arith.constant 0 : index
    %c0_16 = arith.constant 0 : index
    %20 = vector.load %arg7[%c0_15, %c0_16] : memref<1x128xf32, #tpu.memory_space<vmem>>, vector<1x128xf32>
    %21 = vector.broadcast %20 : vector<1x128xf32> to vector<256x128xf32>
    %22 = arith.addf %19, %21 : vector<256x128xf32>
    %cst_17 = arith.constant dense<0.000000e+00> : vector<256xf32>
    %23 = vector.multi_reduction <add>, %22, %cst_17 [1] : vector<256x128xf32> to vector<256xf32>
    %24 = vector.shape_cast %23 : vector<256xf32> to vector<256x1xf32>
    %cst_18 = arith.constant 1.280000e+02 : f32
    %25 = vector.broadcast %cst_18 : f32 to vector<256x1xf32>
    %26 = arith.divf %24, %25 : vector<256x1xf32>
    %27 = vector.broadcast %26 : vector<256x1xf32> to vector<256x128xf32>
    %28 = arith.subf %22, %27 : vector<256x128xf32>
    %29 = arith.mulf %28, %28 : vector<256x128xf32>
    %cst_19 = arith.constant dense<0.000000e+00> : vector<256xf32>
    %30 = vector.multi_reduction <add>, %29, %cst_19 [1] : vector<256x128xf32> to vector<256xf32>
    %31 = vector.shape_cast %30 : vector<256xf32> to vector<256x1xf32>
    %cst_20 = arith.constant 1.280000e+02 : f32
    %32 = vector.broadcast %cst_20 : f32 to vector<256x1xf32>
    %33 = arith.divf %31, %32 : vector<256x1xf32>
    %cst_21 = arith.constant 9.99999974E-6 : f32
    %34 = vector.broadcast %cst_21 : f32 to vector<256x1xf32>
    %35 = arith.addf %33, %34 : vector<256x1xf32>
    %36 = math.rsqrt %35 : vector<256x1xf32>
    %37 = vector.broadcast %36 : vector<256x1xf32> to vector<256x128xf32>
    %38 = arith.mulf %28, %37 : vector<256x128xf32>
    %c0_22 = arith.constant 0 : index
    %c0_23 = arith.constant 0 : index
    %39 = vector.load %arg8[%c0_22, %c0_23] : memref<1x128xf32, #tpu.memory_space<vmem>>, vector<1x128xf32>
    %40 = vector.broadcast %39 : vector<1x128xf32> to vector<256x128xf32>
    %41 = arith.mulf %38, %40 : vector<256x128xf32>
    %c0_24 = arith.constant 0 : index
    %c0_25 = arith.constant 0 : index
    %42 = vector.load %arg9[%c0_24, %c0_25] : memref<1x128xf32, #tpu.memory_space<vmem>>, vector<1x128xf32>
    %43 = vector.broadcast %42 : vector<1x128xf32> to vector<256x128xf32>
    %44 = arith.addf %41, %43 : vector<256x128xf32>
    %45 = arith.truncf %44 : vector<256x128xf32> to vector<256x128xbf16>
    %c0_26 = arith.constant 0 : index
    %c0_27 = arith.constant 0 : index
    %46 = vector.load %arg10[%c0_26, %c0_27] : memref<256x128xbf16, #tpu.memory_space<vmem>>, vector<256x128xbf16>
    tpu.vector_store %arg10[%c0_26, %c0_27], %45 {strides = array<i32>} : memref<256x128xbf16, #tpu.memory_space<vmem>>, vector<256x128xbf16>,
    return
  }
  func.func @transform_0(%arg0: i32) -> (i32, i32) {
    %c0_i32 = arith.constant 0 : i32
    %c0_i32_0 = arith.constant 0 : i32
    return %arg0, %c0_i32 : i32, i32
  }
  func.func @transform_1(%arg0: i32) -> (i32, i32) {
    %c0_i32 = arith.constant 0 : i32
    %c0_i32_0 = arith.constant 0 : i32
    %c0_i32_1 = arith.constant 0 : i32
    return %c0_i32, %c0_i32_0 : i32, i32
  }
  func.func @transform_2(%arg0: i32) -> (i32, i32) {
    %c0_i32 = arith.constant 0 : i32
    %c0_i32_0 = arith.constant 0 : i32
    %c0_i32_1 = arith.constant 0 : i32
    return %c0_i32, %c0_i32_0 : i32, i32
  }
  func.func @transform_3(%arg0: i32) -> (i32, i32) {
    %c0_i32 = arith.constant 0 : i32
    %c0_i32_0 = arith.constant 0 : i32
    %c0_i32_1 = arith.constant 0 : i32
    return %c0_i32, %c0_i32_0 : i32, i32
  }
  func.func @transform_4(%arg0: i32) -> (i32, i32) {
    %c0_i32 = arith.constant 0 : i32
    %c0_i32_0 = arith.constant 0 : i32
    %c0_i32_1 = arith.constant 0 : i32
    return %c0_i32, %c0_i32_0 : i32, i32
  }
  func.func @transform_5(%arg0: i32) -> (i32, i32) {
    %c0_i32 = arith.constant 0 : i32
    %c0_i32_0 = arith.constant 0 : i32
    %c0_i32_1 = arith.constant 0 : i32
    return %c0_i32, %c0_i32_0 : i32, i32
  }
  func.func @transform_6(%arg0: i32) -> (i32, i32) {
    %c0_i32 = arith.constant 0 : i32
    %c0_i32_0 = arith.constant 0 : i32
    %c0_i32_1 = arith.constant 0 : i32
    return %c0_i32, %c0_i32_0 : i32, i32
  }
  func.func @transform_7(%arg0: i32) -> (i32, i32) {
    %c0_i32 = arith.constant 0 : i32
    %c0_i32_0 = arith.constant 0 : i32
    %c0_i32_1 = arith.constant 0 : i32
    return %c0_i32, %c0_i32_0 : i32, i32
  }
  func.func @transform_8(%arg0: i32) -> (i32, i32) {
    %c0_i32 = arith.constant 0 : i32
    %c0_i32_0 = arith.constant 0 : i32
    %c0_i32_1 = arith.constant 0 : i32
    return %c0_i32, %c0_i32_0 : i32, i32
  }
  func.func @transform_9(%arg0: i32) -> (i32, i32) {
    %c0_i32 = arith.constant 0 : i32
    %c0_i32_0 = arith.constant 0 : i32
    return %arg0, %c0_i32 : i32, i32
  }
}

</mosaic_0001>

<bundles_post_ra>
// kernel: node_model_forward.1
= control target key start
LH: loop header
LB: loop body
LE: loop exit
PB: predicated region body
PF: predicated region fallthrough
CT: control target
= control target key end

     0   :  { %vm104_vm0 = vcmask 261120   ;;  %s2703_s1 = inlined_call_operand.vmem [shape: bf16[32,128], index: 1, kind: input, shape index: {}]   ;;  %s2704_s0 = inlined_call_operand.vmem [shape: f32[256,32], index: 0, kind: input, shape index: {}]   ;;  %s2705_s3 = inlined_call_operand.vmem [shape: bf16[128,128], index: 3, kind: input, shape index: {}]   ;;  %s2706_s5 = inlined_call_operand.vmem [shape: bf16[128,128], index: 5, kind: input, shape index: {}]   ;;  %s2707_s2 = inlined_call_operand.vmem [shape: f32[1,128], index: 2, kind: input, shape index: {}]   ;;  %s2708_s4 = inlined_call_operand.vmem [shape: f32[1,128], index: 4, kind: input, shape index: {}]   ;;  %s2709_s6 = inlined_call_operand.vmem [shape: f32[1,128], index: 6, kind: input, shape index: {}]   ;;  %s2710_s7 = inlined_call_operand.vmem [shape: f32[1,128], index: 7, kind: input, shape index: {}]   ;;  %s2711_s8 = inlined_call_operand.vmem [shape: f32[1,128], index: 8, kind: input, shape index: {}]   ;;  %s2712_s9 = inlined_call_operand.vmem [shape: bf16[256,128], index: 9, kind: output, shape index: {}]  }
   0x1   :  { %v1869_v0 = vld [vmem:[%s2703_s1 + $0x8] sm:$0xff]   ;;  %v1870_v1 = vld [vmem:[%s2703_s1] sm:$0xff]   ;;  %v35_v5 = vld [vmem:[%s2704_s0 + $0x10] sm:$0xff] }
   0x2   :  { %1733 = vmatprep.subr.bf16.mxu0 %v1869_v0  ;;  %v33_v2 = vld [vmem:[%s2704_s0] sm:$0xff]  ;;  %v34_v3 = vld [vmem:[%s2704_s0 + $0x8] sm:$0xff]  ;;  %1865 = vmatprep.subr.bf16.mxu1 %v1869_v0  ;;  %v36_v6 = vld [vmem:[%s2704_s0 + $0x18] sm:$0xff] }
   0x3   :  { %1734 = vmatpush3.bf16.msra.mxu0 %v1869_v0  ;;  %v65_v4 = vpack.c.bf16 %v34_v3, %v33_v2  ;;  %1867 = vmatpush3.bf16.msra.mxu1 %v1869_v0  ;;  %v37_v7 = vld [vmem:[%s2704_s0 + $0x20] sm:$0xff]  ;;  %v38_v8 = vld [vmem:[%s2704_s0 + $0x28] sm:$0xff]  ;;  %v66_v9 = vpack.c.bf16 %v36_v6, %v35_v5  ;;  %v51_v14 = vld [vmem:[%s2704_s0 + $0x90] sm:$0xff] }
   0x4   :  { %1735 = vmatprep.subr.bf16.mxu0 %v1870_v1  ;;  %1866 = vmatprep.subr.bf16.mxu1 %v1870_v1  ;;  %v67_v10 = vpack.c.bf16 %v38_v8, %v37_v7  ;;  %v49_v11 = vld [vmem:[%s2704_s0 + $0x80] sm:$0xff]  ;;  %v50_v12 = vld [vmem:[%s2704_s0 + $0x88] sm:$0xff]  ;;  %v52_v15 = vld [vmem:[%s2704_s0 + $0x98] sm:$0xff] }
   0x5   :  { %1737 = vmatprep.mubr.msk.bf16.mxu0 %vm104_vm0, %v65_v4  ;;  %v73_v13 = vpack.c.bf16 %v50_v12, %v49_v11  ;;  %v53_v16 = vld [vmem:[%s2704_s0 + $0xa0] sm:$0xff]  ;;  %v74_v17 = vpack.c.bf16 %v52_v15, %v51_v14  ;;  %v54_v18 = vld [vmem:[%s2704_s0 + $0xa8] sm:$0xff]  ;;  %v39_v19 = vld [vmem:[%s2704_s0 + $0x30] sm:$0xff] }
   0x6   :  { %v40_v20 = vld [vmem:[%s2704_s0 + $0x38] sm:$0xff]  ;;  %v41_v21 = vld [vmem:[%s2704_s0 + $0x40] sm:$0xff]  ;;  %v75_v22 = vpack.c.bf16 %v54_v18, %v53_v16  ;;  %v42_v23 = vld [vmem:[%s2704_s0 + $0x48] sm:$0xff] }
   0x7   :  { %1736 = vmatpush3.bf16.msra.mxu0 %v1870_v1  ;;  %1868 = vmatpush3.bf16.msra.mxu1 %v1870_v1  ;;  %v55_v24 = vld [vmem:[%s2704_s0 + $0xb0] sm:$0xff]  ;;  %v56_v25 = vld [vmem:[%s2704_s0 + $0xb8] sm:$0xff]  ;;  %v57_v26 = vld [vmem:[%s2704_s0 + $0xc0] sm:$0xff]  ;;  %v68_v29 = vpack.c.bf16 %v40_v20, %v39_v19  ;;  %v69_v31 = vpack.c.bf16 %v42_v23, %v41_v21 }
   0x8   :  { %1753 = vmatprep.mubr.msk.bf16.mxu1 %vm104_vm0, %v73_v13  ;;  %v58_v27 = vld [vmem:[%s2704_s0 + $0xc8] sm:$0xff]  ;;  %v1871_v28 = vld [vmem:[%s2705_s3 + $0x38] sm:$0xff]   ;;  %v1872_v30 = vld [vmem:[%s2705_s3 + $0x30] sm:$0xff]   ;;  %v76_v32 = vpack.c.bf16 %v56_v25, %v55_v24 }
   0x9   :  { %1769 = vmatprep.subr.bf16.mxu1 %v1871_v28  ;;  %v77_v33 = vpack.c.bf16 %v58_v27, %v57_v26  ;;  %v43_v34 = vld [vmem:[%s2704_s0 + $0x50] sm:$0xff]  ;;  %v44_v35 = vld [vmem:[%s2704_s0 + $0x58] sm:$0xff]  ;;  %v1873_v36 = vld [vmem:[%s2705_s3 + $0x28] sm:$0xff]  }
   0xa   :  { %1738 = vmatmul.mubr.msk.bf16.vlgmr.msra.gmra.mxu0 %vm104_vm0, %v66_v9  ;;  %1754 = vmatmul.mubr.msk.bf16.vlgmr.msra.gmra.mxu1 %vm104_vm0, %v74_v17  ;;  %v45_v37 = vld [vmem:[%s2704_s0 + $0x60] sm:$0xff]  ;;  %v46_v38 = vld [vmem:[%s2704_s0 + $0x68] sm:$0xff]  ;;  %v59_v39 = vld [vmem:[%s2704_s0 + $0xd0] sm:$0xff]  ;;  %v70_v44 = vpack.c.bf16 %v44_v35, %v43_v34 }
   0xb   :  { %1741 = vmatprep.mubr.msk.bf16.mxu0 %vm104_vm0, %v67_v10  ;;  %1757 = vmatprep.mubr.msk.bf16.mxu1 %vm104_vm0, %v75_v22  ;;  %v60_v40 = vld [vmem:[%s2704_s0 + $0xd8] sm:$0xff]  ;;  %v61_v41 = vld [vmem:[%s2704_s0 + $0xe0] sm:$0xff]  ;;  %v62_v42 = vld [vmem:[%s2704_s0 + $0xe8] sm:$0xff]  ;;  %v71_v45 = vpack.c.bf16 %v46_v38, %v45_v37 }
   0xc   :  { %1770 = vmatpush3.bf16.msra.mxu1 %v1871_v28  ;;  %v1874_v43 = vld [vmem:[%s2705_s3 + $0x20] sm:$0xff]   ;;  %v78_v46 = vpack.c.bf16 %v60_v40, %v59_v39  ;;  %v79_v47 = vpack.c.bf16 %v62_v42, %v61_v41  ;;  %v1875_v48 = vld [vmem:[%s2705_s3 + $0x18] sm:$0xff]   ;;  %v47_v49 = vld [vmem:[%s2704_s0 + $0x70] sm:$0xff] }
   0xd   :  { %1771 = vmatprep.subr.bf16.mxu1 %v1872_v30  ;;  %v48_v50 = vld [vmem:[%s2704_s0 + $0x78] sm:$0xff]  ;;  %v63_v51 = vld [vmem:[%s2704_s0 + $0xf0] sm:$0xff]  ;;  %v1877_v56 = vld [vmem:[%s2705_s3 + $0x8] sm:$0xff]  }
   0xe   :  { %v64_v52 = vld [vmem:[%s2704_s0 + $0xf8] sm:$0xff]  ;;  %v72_v53 = vpack.c.bf16 %v48_v50, %v47_v49  ;;  %v1876_v55 = vld [vmem:[%s2705_s3 + $0x10] sm:$0xff]   ;;  %v1878_v57 = vld [vmem:[%s2705_s3] sm:$0xff]  }
   0xf   :  { %v80_v54 = vpack.c.bf16 %v64_v52, %v63_v51  ;;  %v1879_v58 = vld [vmem:[%s2706_s5 + $0x38] sm:$0xff]   ;;  %v1880_v59 = vld [vmem:[%s2706_s5 + $0x30] sm:$0xff]   ;;  %v1881_v60 = vld [vmem:[%s2706_s5 + $0x28] sm:$0xff]  }
  0x10   :  { %1772 = vmatpush3.bf16.msra.mxu1 %v1872_v30  ;;  %1817 = vmatprep.subr.bf16.mxu0 %v1879_v58  ;;  %v1882_v61 = vld [vmem:[%s2706_s5 + $0x20] sm:$0xff]   ;;  %v1883_v62 = vld [vmem:[%s2706_s5 + $0x18] sm:$0xff]  }
  0x11   :  { %1773 = vmatprep.subr.bf16.mxu1 %v1873_v36  ;;  %1818 = vmatpush3.bf16.msra.mxu0 %v1879_v58  ;;  %v2163_v2 = vld [vmem:[%s2707_s2] ss:$0 sm:$0xff] }
  0x12   :  { %1742 = vmatmul.mubr.msk.bf16.gmra.mxu0 %vm104_vm0, %v68_v29  ;;  %1758 = vmatmul.mubr.msk.bf16.gmra.mxu1 %vm104_vm0, %v76_v32 }
  0x13   :  { %1745 = vmatprep.mubr.msk.bf16.mxu0 %vm104_vm0, %v69_v31  ;;  %1761 = vmatprep.mubr.msk.bf16.mxu1 %vm104_vm0, %v77_v33 }
  0x14   :  { %1774 = vmatpush3.bf16.msra.mxu1 %v1873_v36  ;;  %1819 = vmatprep.subr.bf16.mxu0 %v1880_v59 }
  0x15   :  { %1775 = vmatprep.subr.bf16.mxu1 %v1874_v43  ;;  %1820 = vmatpush3.bf16.msra.mxu0 %v1880_v59 }
  0x16   :  { %1821 = vmatprep.subr.bf16.mxu0 %v1881_v60 }
  0x18   :  { %1776 = vmatpush3.bf16.msra.mxu1 %v1874_v43 }
  0x19   :  { %1777 = vmatprep.subr.bf16.mxu1 %v1875_v48  ;;  %1822 = vmatpush3.bf16.msra.mxu0 %v1881_v60 }
  0x1a   :  { %1746 = vmatmul.mubr.msk.bf16.gmra.mxu0 %vm104_vm0, %v70_v44  ;;  %1762 = vmatmul.mubr.msk.bf16.gmra.mxu1 %vm104_vm0, %v78_v46 }
  0x1b   :  { %1749 = vmatprep.mubr.msk.bf16.mxu0 %vm104_vm0, %v71_v45  ;;  %1765 = vmatprep.mubr.msk.bf16.mxu1 %vm104_vm0, %v79_v47 }
  0x1c   :  { %1778 = vmatpush3.bf16.msra.mxu1 %v1875_v48  ;;  %1823 = vmatprep.subr.bf16.mxu0 %v1882_v61 }
  0x1d   :  { %1779 = vmatprep.subr.bf16.mxu1 %v1876_v55  ;;  %1824 = vmatpush3.bf16.msra.mxu0 %v1882_v61 }
  0x1e   :  { %1825 = vmatprep.subr.bf16.mxu0 %v1883_v62 }
  0x20   :  { %1780 = vmatpush3.bf16.msra.mxu1 %v1876_v55 }
  0x21   :  { %1781 = vmatprep.subr.bf16.mxu1 %v1877_v56  ;;  %1826 = vmatpush3.bf16.msra.mxu0 %v1883_v62 }
  0x22   :  { %1750 = vmatmul.mubr.msk.bf16.gmra.mxu0 %vm104_vm0, %v72_v53  ;;  %1766 = vmatmul.mubr.msk.bf16.gmra.mxu1 %vm104_vm0, %v80_v54 }
  0x24   :  { %1782 = vmatpush3.bf16.msra.mxu1 %v1877_v56 }
  0x25   :  { %1783 = vmatprep.subr.bf16.mxu1 %v1878_v57 }
  0x28   :  { %1784 = vmatpush3.bf16.msra.mxu1 %v1878_v57 }
  0xca   :  { %v1739_v63 = vpop.f32.mrf.mxu0  ;;  %v2158_v0 = vpop.f32.mrf.mxu1 }
  0xcb   :  { %v196_v8 = vadd.f32 %v1739_v63, %v2163_v2 }
  0xcc   :  { %v187_v1 = vpop.f32.mrf.mxu0  ;;  %v251_v3 = vpop.f32.mrf.mxu1 }
  0xcd   :  { %v188_v5 = vadd.f32 %v2163_v2, %v187_v1  ;;  %v316_v17 = vmax.f32 %v196_v8, 0.0  ;;  %v252_v53 = vadd.f32 %v2163_v2, %v251_v3 }
  0xce   :  { %v1740_v4 = vpop.f32.mrf.mxu0  ;;  %v2167_v7 = vpop.f32.mrf.mxu1 }
  0xcf   :  { %v199_v6 = vadd.f32 %v1740_v4, %v2163_v2  ;;  %v314_v14 = vmax.f32 %v188_v5, 0.0  ;;  %v330_v62 = vmax.f32 %v252_v53, 0.0  ;;  %v2222_v53 = vld [vmem:[%s2708_s4] ss:$0 sm:$0xff] }
  0xd0   :  { %v190_v9 = vpop.f32.mrf.mxu0  ;;  %v254_v11 = vpop.f32.mrf.mxu1 }
  0xd1   :  { %v191_v10 = vadd.f32 %v2163_v2, %v190_v9  ;;  %v317_v12 = vmax.f32 %v199_v6, 0.0  ;;  %v255_v54 = vadd.f32 %v2163_v2, %v254_v11 }
  0xd2   :  { %v1743_v13 = vpop.f32.mrf.mxu0  ;;  %v2171_v16 = vpop.f32.mrf.mxu1 }
  0xd3   :  { %v315_v15 = vmax.f32 %v191_v10, 0.0  ;;  %v347_v21 = vpack.c.bf16 %v317_v12, %v316_v17  ;;  %v212_v26 = vadd.f32 %v1743_v13, %v2163_v2  ;;  %v331_v1 = vmax.f32 %v255_v54, 0.0 }
  0xd4   :  { %v203_v18 = vpop.f32.mrf.mxu0  ;;  %v267_v20 = vpop.f32.mrf.mxu1  ;;  %v260_v13 = vadd.f32 %v2158_v0, %v2163_v2  ;;  %v276_v0 = vadd.f32 %v2171_v16, %v2163_v2 }
  0xd5   :  { %v346_v19 = vpack.c.bf16 %v315_v15, %v314_v14  ;;  %v204_v23 = vadd.f32 %v2163_v2, %v203_v18  ;;  %v320_v34 = vmax.f32 %v212_v26, 0.0  ;;  %v354_v10 = vpack.c.bf16 %v331_v1, %v330_v62 }
  0xd6   :  { %v1744_v22 = vpop.f32.mrf.mxu0  ;;  %v2175_v25 = vpop.f32.mrf.mxu1  ;;  %v268_v11 = vadd.f32 %v2163_v2, %v267_v20  ;;  %v263_v15 = vadd.f32 %v2167_v7, %v2163_v2 }
  0xd7   :  { %v215_v24 = vadd.f32 %v1744_v22, %v2163_v2  ;;  %1785 = vmatprep.mubr.bf16.mxu1 %v346_v19  ;;  %v318_v32 = vmax.f32 %v204_v23, 0.0  ;;  %v279_v7 = vadd.f32 %v2175_v25, %v2163_v2 }
  0xd8   :  { %v206_v27 = vpop.f32.mrf.mxu0  ;;  %1786 = vmatmul.mubr.bf16.vlgmr.msra.gmra.mxu1 %v347_v21  ;;  %v270_v31 = vpop.f32.mrf.mxu1  ;;  %v334_v18 = vmax.f32 %v268_v11, 0.0  ;;  %v332_v21 = vmax.f32 %v260_v13, 0.0  ;;  %v333_v22 = vmax.f32 %v263_v15, 0.0 }
  0xd9   :  { %v207_v28 = vadd.f32 %v2163_v2, %v206_v27  ;;  %v321_v29 = vmax.f32 %v215_v24, 0.0  ;;  %v271_v12 = vadd.f32 %v2163_v2, %v270_v31  ;;  %v336_v31 = vmax.f32 %v276_v0, 0.0 }
  0xda   :  { %v1747_v30 = vpop.f32.mrf.mxu0  ;;  %v2179_v39 = vpop.f32.mrf.mxu1  ;;  %v355_v27 = vpack.c.bf16 %v333_v22, %v332_v21 }
  0xdb   :  { %v319_v33 = vmax.f32 %v207_v28, 0.0  ;;  %v349_v37 = vpack.c.bf16 %v321_v29, %v320_v34  ;;  %v228_v42 = vadd.f32 %v1747_v30, %v2163_v2  ;;  %v335_v19 = vmax.f32 %v271_v12, 0.0 }
  0xdc   :  { %v219_v35 = vpop.f32.mrf.mxu0  ;;  %v283_v47 = vpop.f32.mrf.mxu1  ;;  %v292_v16 = vadd.f32 %v2179_v39, %v2163_v2  ;;  %v1884_v39 = vld [vmem:[%s2706_s5 + $0x10] sm:$0xff]  }
  0xdd   :  { %v348_v36 = vpack.c.bf16 %v319_v33, %v318_v32  ;;  %v220_v40 = vadd.f32 %v2163_v2, %v219_v35  ;;  %v324_v50 = vmax.f32 %v228_v42, 0.0  ;;  %v356_v24 = vpack.c.bf16 %v335_v19, %v334_v18  ;;  %1827 = vmatprep.subr.bf16.mxu0 %v1884_v39 }
  0xde   :  { %v1748_v38 = vpop.f32.mrf.mxu0  ;;  %v1764_v57 = vpop.f32.mrf.mxu1  ;;  %v284_v20 = vadd.f32 %v2163_v2, %v283_v47  ;;  %v337_v32 = vmax.f32 %v279_v7, 0.0  ;;  %1828 = vmatpush3.bf16.msra.mxu0 %v1884_v39 }
  0xdf   :  { %v231_v41 = vadd.f32 %v1748_v38, %v2163_v2  ;;  %1789 = vmatprep.mubr.bf16.mxu1 %v348_v36  ;;  %v322_v48 = vmax.f32 %v220_v40, 0.0  ;;  %v295_v38 = vadd.f32 %v1764_v57, %v2163_v2 }
  0xe0   :  { %v222_v43 = vpop.f32.mrf.mxu0  ;;  %1790 = vmatmul.mubr.bf16.gmra.mxu1 %v349_v37  ;;  %v286_v3 = vpop.f32.mrf.mxu1  ;;  %v338_v29 = vmax.f32 %v284_v20, 0.0  ;;  %v357_v37 = vpack.c.bf16 %v337_v32, %v336_v31 }
  0xe1   :  { %v223_v44 = vadd.f32 %v2163_v2, %v222_v43  ;;  %v325_v45 = vmax.f32 %v231_v41, 0.0  ;;  %v287_v26 = vadd.f32 %v2163_v2, %v286_v3  ;;  %v340_v41 = vmax.f32 %v292_v16, 0.0 }
  0xe2   :  { %v1751_v46 = vpop.f32.mrf.mxu0  ;;  %v1767_v17 = vpop.f32.mrf.mxu1  ;;  %v341_v42 = vmax.f32 %v295_v38, 0.0 }
  0xe3   :  { %v323_v49 = vmax.f32 %v223_v44, 0.0  ;;  %v351_v55 = vpack.c.bf16 %v325_v45, %v324_v50  ;;  %v244_v60 = vadd.f32 %v1751_v46, %v2163_v2  ;;  %v339_v30 = vmax.f32 %v287_v26, 0.0  ;;  %v1885_v50 = vld [vmem:[%s2706_s5 + $0x8] sm:$0xff]  }
  0xe4   :  { %v235_v51 = vpop.f32.mrf.mxu0  ;;  %v299_v23 = vpop.f32.mrf.mxu1  ;;  %v359_v44 = vpack.c.bf16 %v341_v42, %v340_v41  ;;  %v308_v45 = vadd.f32 %v1767_v17, %v2163_v2  ;;  %1829 = vmatprep.subr.bf16.mxu0 %v1885_v50 }
  0xe5   :  { %v350_v52 = vpack.c.bf16 %v323_v49, %v322_v48  ;;  %v236_v58 = vadd.f32 %v2163_v2, %v235_v51  ;;  %v328_v8 = vmax.f32 %v244_v60, 0.0  ;;  %v358_v34 = vpack.c.bf16 %v339_v30, %v338_v29  ;;  %1830 = vmatpush3.bf16.msra.mxu0 %v1885_v50 }
  0xe6   :  { %v1752_v56 = vpop.f32.mrf.mxu0  ;;  %v1768_v28 = vpop.f32.mrf.mxu1  ;;  %v300_v35 = vadd.f32 %v2163_v2, %v299_v23  ;;  %v344_v47 = vmax.f32 %v308_v45, 0.0 }
  0xe7   :  { %v247_v59 = vadd.f32 %v1752_v56, %v2163_v2  ;;  %1793 = vmatprep.mubr.bf16.mxu1 %v350_v52  ;;  %v326_v5 = vmax.f32 %v236_v58, 0.0  ;;  %v311_v46 = vadd.f32 %v1768_v28, %v2163_v2 }
  0xe8   :  { %v238_v61 = vpop.f32.mrf.mxu0  ;;  %1794 = vmatmul.mubr.bf16.gmra.mxu1 %v351_v55  ;;  %v302_v33 = vpop.f32.mrf.mxu1  ;;  %v342_v25 = vmax.f32 %v300_v35, 0.0 }
  0xe9   :  { %v239_v63 = vadd.f32 %v2163_v2, %v238_v61  ;;  %v329_v4 = vmax.f32 %v247_v59, 0.0  ;;  %v303_v36 = vadd.f32 %v2163_v2, %v302_v33  ;;  %v345_v48 = vmax.f32 %v311_v46, 0.0  ;;  %v1886_v2 = vld [vmem:[%s2706_s5] sm:$0xff]  }
  0xea   :  { %1831 = vmatprep.subr.bf16.mxu0 %v1886_v2 }
  0xeb   :  { %v327_v6 = vmax.f32 %v239_v63, 0.0  ;;  %v353_v14 = vpack.c.bf16 %v329_v4, %v328_v8  ;;  %v343_v40 = vmax.f32 %v303_v36, 0.0  ;;  %v361_v49 = vpack.c.bf16 %v345_v48, %v344_v47  ;;  %1832 = vmatpush3.bf16.msra.mxu0 %v1886_v2 }
  0xed   :  { %v352_v9 = vpack.c.bf16 %v327_v6, %v326_v5  ;;  %v360_v43 = vpack.c.bf16 %v343_v40, %v342_v25 }
  0xef   :  { %1797 = vmatprep.mubr.bf16.mxu1 %v352_v9 }
  0xf0   :  { %1798 = vmatmul.mubr.bf16.gmra.mxu1 %v353_v14 }
  0xf1   :  { %1801 = vmatprep.mubr.bf16.mxu1 %v354_v10 }
  0xf8   :  { %1802 = vmatmul.mubr.bf16.gmra.mxu1 %v355_v27 }
  0xf9   :  { %1805 = vmatprep.mubr.bf16.mxu1 %v356_v24 }
 0x100   :  { %1806 = vmatmul.mubr.bf16.gmra.mxu1 %v357_v37 }
 0x101   :  { %1809 = vmatprep.mubr.bf16.mxu1 %v358_v34 }
 0x108   :  { %1810 = vmatmul.mubr.bf16.gmra.mxu1 %v359_v44 }
 0x109   :  { %1813 = vmatprep.mubr.bf16.mxu1 %v360_v43 }
 0x110   :  { %1814 = vmatmul.mubr.bf16.gmra.mxu1 %v361_v49 }
 0x198   :  { %v1787_v51 = vpop.f32.mrf.mxu1 }
 0x199   :  { %v476_v57 = vadd.f32 %v1787_v51, %v2222_v53 }
 0x19a   :  { %v467_v52 = vpop.f32.mrf.mxu1 }
 0x19b   :  { %v468_v55 = vadd.f32 %v2222_v53, %v467_v52  ;;  %v596_v1 = vmax.f32 %v476_v57, 0.0 }
 0x19c   :  { %v1788_v54 = vpop.f32.mrf.mxu1 }
 0x19d   :  { %v479_v56 = vadd.f32 %v1788_v54, %v2222_v53  ;;  %v594_v62 = vmax.f32 %v468_v55, 0.0 }
 0x19e   :  { %v470_v58 = vpop.f32.mrf.mxu1 }
 0x19f   :  { %v471_v59 = vadd.f32 %v2222_v53, %v470_v58  ;;  %v597_v60 = vmax.f32 %v479_v56, 0.0 }
 0x1a0   :  { %v1791_v61 = vpop.f32.mrf.mxu1 }
 0x1a1   :  { %v595_v63 = vmax.f32 %v471_v59, 0.0  ;;  %v627_v5 = vpack.c.bf16 %v597_v60, %v596_v1  ;;  %v492_v10 = vadd.f32 %v1791_v61, %v2222_v53 }
 0x1a2   :  { %v483_v4 = vpop.f32.mrf.mxu1 }
 0x1a3   :  { %v626_v3 = vpack.c.bf16 %v595_v63, %v594_v62  ;;  %v484_v8 = vadd.f32 %v2222_v53, %v483_v4  ;;  %v600_v18 = vmax.f32 %v492_v10, 0.0 }
 0x1a4   :  { %v1792_v6 = vpop.f32.mrf.mxu1 }
 0x1a5   :  { %v495_v9 = vadd.f32 %v1792_v6, %v2222_v53  ;;  %1833 = vmatprep.mubr.bf16.mxu0 %v626_v3  ;;  %v598_v15 = vmax.f32 %v484_v8, 0.0 }
 0x1a6   :  { %v486_v11 = vpop.f32.mrf.mxu1  ;;  %1834 = vmatmul.mubr.bf16.vlgmr.msra.gmra.mxu0 %v627_v5 }
 0x1a7   :  { %v487_v12 = vadd.f32 %v2222_v53, %v486_v11  ;;  %v601_v13 = vmax.f32 %v495_v9, 0.0 }
 0x1a8   :  { %v1795_v14 = vpop.f32.mrf.mxu1 }
 0x1a9   :  { %v599_v17 = vmax.f32 %v487_v12, 0.0  ;;  %v629_v22 = vpack.c.bf16 %v601_v13, %v600_v18  ;;  %v508_v26 = vadd.f32 %v1795_v14, %v2222_v53 }
 0x1aa   :  { %v499_v19 = vpop.f32.mrf.mxu1 }
 0x1ab   :  { %v628_v21 = vpack.c.bf16 %v599_v17, %v598_v15  ;;  %v500_v24 = vadd.f32 %v2222_v53, %v499_v19  ;;  %v604_v31 = vmax.f32 %v508_v26, 0.0 }
 0x1ac   :  { %v1796_v23 = vpop.f32.mrf.mxu1 }
 0x1ad   :  { %v511_v20 = vadd.f32 %v1796_v23, %v2222_v53  ;;  %1837 = vmatprep.mubr.bf16.mxu0 %v628_v21  ;;  %v602_v29 = vmax.f32 %v500_v24, 0.0 }
 0x1ae   :  { %v502_v27 = vpop.f32.mrf.mxu1  ;;  %1838 = vmatmul.mubr.bf16.gmra.mxu0 %v629_v22 }
 0x1af   :  { %v503_v0 = vadd.f32 %v2222_v53, %v502_v27  ;;  %v605_v7 = vmax.f32 %v511_v20, 0.0 }
 0x1b0   :  { %v1799_v28 = vpop.f32.mrf.mxu1 }
 0x1b1   :  { %v603_v30 = vmax.f32 %v503_v0, 0.0  ;;  %v631_v34 = vpack.c.bf16 %v605_v7, %v604_v31  ;;  %v524_v16 = vadd.f32 %v1799_v28, %v2222_v53 }
 0x1b2   :  { %v515_v32 = vpop.f32.mrf.mxu1 }
 0x1b3   :  { %v630_v33 = vpack.c.bf16 %v603_v30, %v602_v29  ;;  %v516_v36 = vadd.f32 %v2222_v53, %v515_v32  ;;  %v608_v44 = vmax.f32 %v524_v16, 0.0 }
 0x1b4   :  { %v1800_v35 = vpop.f32.mrf.mxu1 }
 0x1b5   :  { %v527_v37 = vadd.f32 %v1800_v35, %v2222_v53  ;;  %1841 = vmatprep.mubr.bf16.mxu0 %v630_v33  ;;  %v606_v42 = vmax.f32 %v516_v36, 0.0 }
 0x1b6   :  { %v518_v38 = vpop.f32.mrf.mxu1  ;;  %1842 = vmatmul.mubr.bf16.gmra.mxu0 %v631_v34 }
 0x1b7   :  { %v519_v25 = vadd.f32 %v2222_v53, %v518_v38  ;;  %v609_v40 = vmax.f32 %v527_v37, 0.0 }
 0x1b8   :  { %v1803_v41 = vpop.f32.mrf.mxu1 }
 0x1b9   :  { %v607_v43 = vmax.f32 %v519_v25, 0.0  ;;  %v633_v47 = vpack.c.bf16 %v609_v40, %v608_v44  ;;  %v540_v50 = vadd.f32 %v1803_v41, %v2222_v53  ;;  %v2259_v25 = vld [vmem:[%s2709_s6] ss:$0 sm:$0xff] }
 0x1ba   :  { %v531_v45 = vpop.f32.mrf.mxu1 }
 0x1bb   :  { %v632_v46 = vpack.c.bf16 %v607_v43, %v606_v42  ;;  %v532_v49 = vadd.f32 %v2222_v53, %v531_v45  ;;  %v612_v57 = vmax.f32 %v540_v50, 0.0 }
 0x1bc   :  { %v1804_v48 = vpop.f32.mrf.mxu1 }
 0x1bd   :  { %v543_v39 = vadd.f32 %v1804_v48, %v2222_v53  ;;  %1845 = vmatprep.mubr.bf16.mxu0 %v632_v46  ;;  %v610_v55 = vmax.f32 %v532_v49, 0.0 }
 0x1be   :  { %v534_v2 = vpop.f32.mrf.mxu1  ;;  %1846 = vmatmul.mubr.bf16.gmra.mxu0 %v633_v47 }
 0x1bf   :  { %v535_v51 = vadd.f32 %v2222_v53, %v534_v2  ;;  %v613_v52 = vmax.f32 %v543_v39, 0.0 }
 0x1c0   :  { %v1807_v54 = vpop.f32.mrf.mxu1 }
 0x1c1   :  { %v611_v56 = vmax.f32 %v535_v51, 0.0  ;;  %v635_v60 = vpack.c.bf16 %v613_v52, %v612_v57  ;;  %v556_v1 = vadd.f32 %v1807_v54, %v2222_v53 }
 0x1c2   :  { %v547_v58 = vpop.f32.mrf.mxu1 }
 0x1c3   :  { %v634_v59 = vpack.c.bf16 %v611_v56, %v610_v55  ;;  %v548_v62 = vadd.f32 %v2222_v53, %v547_v58  ;;  %v616_v10 = vmax.f32 %v556_v1, 0.0 }
 0x1c4   :  { %v1808_v61 = vpop.f32.mrf.mxu1 }
 0x1c5   :  { %v559_v63 = vadd.f32 %v1808_v61, %v2222_v53  ;;  %1849 = vmatprep.mubr.bf16.mxu0 %v634_v59  ;;  %v614_v8 = vmax.f32 %v548_v62, 0.0 }
 0x1c6   :  { %v550_v4 = vpop.f32.mrf.mxu1  ;;  %1850 = vmatmul.mubr.bf16.gmra.mxu0 %v635_v60 }
 0x1c7   :  { %v551_v3 = vadd.f32 %v2222_v53, %v550_v4  ;;  %v617_v5 = vmax.f32 %v559_v63, 0.0 }
 0x1c8   :  { %v1811_v6 = vpop.f32.mrf.mxu1 }
 0x1c9   :  { %v615_v9 = vmax.f32 %v551_v3, 0.0  ;;  %v637_v13 = vpack.c.bf16 %v617_v5, %v616_v10  ;;  %v572_v18 = vadd.f32 %v1811_v6, %v2222_v53 }
 0x1ca   :  { %v563_v11 = vpop.f32.mrf.mxu1 }
 0x1cb   :  { %v636_v12 = vpack.c.bf16 %v615_v9, %v614_v8  ;;  %v564_v15 = vadd.f32 %v2222_v53, %v563_v11  ;;  %v620_v26 = vmax.f32 %v572_v18, 0.0 }
 0x1cc   :  { %v1812_v14 = vpop.f32.mrf.mxu1 }
 0x1cd   :  { %v575_v17 = vadd.f32 %v1812_v14, %v2222_v53  ;;  %1853 = vmatprep.mubr.bf16.mxu0 %v636_v12  ;;  %v618_v24 = vmax.f32 %v564_v15, 0.0 }
 0x1ce   :  { %v566_v19 = vpop.f32.mrf.mxu1  ;;  %1854 = vmatmul.mubr.bf16.gmra.mxu0 %v637_v13 }
 0x1cf   :  { %v567_v21 = vadd.f32 %v2222_v53, %v566_v19  ;;  %v621_v22 = vmax.f32 %v575_v17, 0.0 }
 0x1d0   :  { %v1815_v23 = vpop.f32.mrf.mxu1 }
 0x1d1   :  { %v619_v20 = vmax.f32 %v567_v21, 0.0  ;;  %v639_v7 = vpack.c.bf16 %v621_v22, %v620_v26  ;;  %v588_v31 = vadd.f32 %v1815_v23, %v2222_v53 }
 0x1d2   :  { %v579_v27 = vpop.f32.mrf.mxu1 }
 0x1d3   :  { %v638_v0 = vpack.c.bf16 %v619_v20, %v618_v24  ;;  %v580_v29 = vadd.f32 %v2222_v53, %v579_v27  ;;  %v624_v37 = vmax.f32 %v588_v31, 0.0 }
 0x1d4   :  { %v1816_v28 = vpop.f32.mrf.mxu1 }
 0x1d5   :  { %v591_v30 = vadd.f32 %v1816_v28, %v2222_v53  ;;  %1857 = vmatprep.mubr.bf16.mxu0 %v638_v0  ;;  %v622_v35 = vmax.f32 %v580_v29, 0.0 }
 0x1d6   :  { %v582_v32 = vpop.f32.mrf.mxu1  ;;  %1858 = vmatmul.mubr.bf16.gmra.mxu0 %v639_v7 }
 0x1d7   :  { %v583_v33 = vadd.f32 %v2222_v53, %v582_v32  ;;  %v625_v34 = vmax.f32 %v591_v30, 0.0 }
 0x1d9   :  { %v623_v36 = vmax.f32 %v583_v33, 0.0  ;;  %v641_v38 = vpack.c.bf16 %v625_v34, %v624_v37 }
 0x1db   :  { %v640_v16 = vpack.c.bf16 %v623_v36, %v622_v35 }
 0x1dd   :  { %1861 = vmatprep.mubr.bf16.mxu0 %v640_v16 }
 0x1de   :  { %1862 = vmatmul.mubr.bf16.gmra.mxu0 %v641_v38 }
 0x266   :  { %v1835_v40 = vpop.f32.mrf.mxu0 }
 0x267   :  { %v2262_v41 = vadd.f32 %v1835_v40, %v2259_v25 }
 0x268   :  { %v747_v42 = vpop.f32.mrf.mxu0 }
 0x269   :  { %v2265_v53 = vadd.f32 %v2259_v25, %v747_v42  ;;  %878 = vadd.xlane.f32.xlu1 %v2262_v41 }
 0x26a   :  { %v1836_v43 = vpop.f32.mrf.mxu0 }
 0x26b   :  { %v2269_v44 = vadd.f32 %v1836_v43, %v2259_v25  ;;  %874 = vadd.xlane.f32.xlu0 %v2265_v53 }
 0x26c   :  { %v750_v45 = vpop.f32.mrf.mxu0 }
 0x26d   :  { %v2273_v46 = vadd.f32 %v2259_v25, %v750_v45  ;;  %880 = vadd.xlane.f32.xlu1 %v2269_v44 }
 0x26e   :  { %v1839_v47 = vpop.f32.mrf.mxu0 }
 0x26f   :  { %876 = vadd.xlane.f32.xlu0 %v2273_v46  ;;  %v2278_v49 = vadd.f32 %v1839_v47, %v2259_v25 }
 0x270   :  { %v763_v48 = vpop.f32.mrf.mxu0 }
 0x271   :  { %v2285_v51 = vadd.f32 %v2259_v25, %v763_v48 }
 0x272   :  { %v1840_v39 = vpop.f32.mrf.mxu0 }
 0x273   :  { %v2281_v50 = vadd.f32 %v1840_v39, %v2259_v25  ;;  %886 = vadd.xlane.f32.xlu0 %v2278_v49 }
 0x274   :  { %v766_v2 = vpop.f32.mrf.mxu0 }
 0x275   :  { %888 = vadd.xlane.f32.xlu1 %v2281_v50  ;;  %v2289_v54 = vadd.f32 %v2259_v25, %v766_v2 }
 0x276   :  { %v1843_v52 = vpop.f32.mrf.mxu0 }
 0x277   :  { %882 = vadd.xlane.f32.xlu0 %v2285_v51  ;;  %v2293_v56 = vadd.f32 %v1843_v52, %v2259_v25 }
 0x278   :  { %v779_v55 = vpop.f32.mrf.mxu0 }
 0x279   :  { %884 = vadd.xlane.f32.xlu1 %v2289_v54  ;;  %v2301_v60 = vadd.f32 %v2259_v25, %v779_v55 }
 0x27a   :  { %v1844_v57 = vpop.f32.mrf.mxu0 }
 0x27b   :  { %v2297_v58 = vadd.f32 %v1844_v57, %v2259_v25  ;;  %894 = vadd.xlane.f32.xlu0 %v2293_v56 }
 0x27c   :  { %v782_v59 = vpop.f32.mrf.mxu0 }
 0x27d   :  { %896 = vadd.xlane.f32.xlu1 %v2297_v58  ;;  %v2305_v62 = vadd.f32 %v2259_v25, %v782_v59 }
 0x27e   :  { %v1847_v61 = vpop.f32.mrf.mxu0 }
 0x27f   :  { %890 = vadd.xlane.f32.xlu0 %v2301_v60  ;;  %v2309_v1 = vadd.f32 %v1847_v61, %v2259_v25 }
 0x280   :  { %v795_v63 = vpop.f32.mrf.mxu0 }
 0x281   :  { %892 = vadd.xlane.f32.xlu1 %v2305_v62  ;;  %v2317_v6 = vadd.f32 %v2259_v25, %v795_v63 }
 0x282   :  { %v1848_v4 = vpop.f32.mrf.mxu0 }
 0x283   :  { %v2313_v3 = vadd.f32 %v1848_v4, %v2259_v25  ;;  %902 = vadd.xlane.f32.xlu0 %v2309_v1 }
 0x284   :  { %v798_v5 = vpop.f32.mrf.mxu0 }
 0x285   :  { %904 = vadd.xlane.f32.xlu1 %v2313_v3  ;;  %v2321_v9 = vadd.f32 %v2259_v25, %v798_v5 }
 0x286   :  { %v1851_v8 = vpop.f32.mrf.mxu0 }
 0x287   :  { %898 = vadd.xlane.f32.xlu0 %v2317_v6  ;;  %v2325_v11 = vadd.f32 %v1851_v8, %v2259_v25 }
 0x288   :  { %v811_v10 = vpop.f32.mrf.mxu0 }
 0x289   :  { %900 = vadd.xlane.f32.xlu1 %v2321_v9  ;;  %v2333_v15 = vadd.f32 %v2259_v25, %v811_v10 }
 0x28a   :  { %v1852_v12 = vpop.f32.mrf.mxu0 }
 0x28b   :  { %v2329_v13 = vadd.f32 %v1852_v12, %v2259_v25  ;;  %910 = vadd.xlane.f32.xlu0 %v2325_v11 }
 0x28c   :  { %v814_v14 = vpop.f32.mrf.mxu0 }
 0x28d   :  { %912 = vadd.xlane.f32.xlu1 %v2329_v13  ;;  %v2337_v18 = vadd.f32 %v2259_v25, %v814_v14 }
 0x28e   :  { %v1855_v17 = vpop.f32.mrf.mxu0 }
 0x28f   :  { %906 = vadd.xlane.f32.xlu0 %v2333_v15  ;;  %v2341_v21 = vadd.f32 %v1855_v17, %v2259_v25 }
 0x290   :  { %v827_v19 = vpop.f32.mrf.mxu0 }
 0x291   :  { %908 = vadd.xlane.f32.xlu1 %v2337_v18  ;;  %v2349_v20 = vadd.f32 %v2259_v25, %v827_v19 }
 0x292   :  { %v1856_v22 = vpop.f32.mrf.mxu0 }
 0x293   :  { %v2345_v23 = vadd.f32 %v1856_v22, %v2259_v25  ;;  %918 = vadd.xlane.f32.xlu0 %v2341_v21 }
 0x294   :  { %v830_v24 = vpop.f32.mrf.mxu0 }
 0x295   :  { %920 = vadd.xlane.f32.xlu1 %v2345_v23  ;;  %v2353_v27 = vadd.f32 %v2259_v25, %v830_v24 }
 0x296   :  { %v1859_v26 = vpop.f32.mrf.mxu0 }
 0x297   :  { %914 = vadd.xlane.f32.xlu0 %v2349_v20  ;;  %v2357_v7 = vadd.f32 %v1859_v26, %v2259_v25 }
 0x298   :  { %v843_v0 = vpop.f32.mrf.mxu0 }
 0x299   :  { %916 = vadd.xlane.f32.xlu1 %v2353_v27  ;;  %v2365_v31 = vadd.f32 %v2259_v25, %v843_v0 }
 0x29a   :  { %v1860_v28 = vpop.f32.mrf.mxu0 }
 0x29b   :  { %v2361_v29 = vadd.f32 %v1860_v28, %v2259_v25  ;;  %926 = vadd.xlane.f32.xlu0 %v2357_v7 }
 0x29c   :  { %v846_v30 = vpop.f32.mrf.mxu0 }
 0x29d   :  { %928 = vadd.xlane.f32.xlu1 %v2361_v29  ;;  %v2369_v33 = vadd.f32 %v2259_v25, %v846_v30 }
 0x29e   :  { %v1863_v32 = vpop.f32.mrf.mxu0 }
 0x29f   :  { %922 = vadd.xlane.f32.xlu0 %v2365_v31  ;;  %v2378_v16 = vadd.f32 %v1863_v32, %v2259_v25 }
 0x2a0   :  { %v859_v34 = vpop.f32.mrf.mxu0 }
 0x2a1   :  { %v2373_v35 = vadd.f32 %v2259_v25, %v859_v34  ;;  %924 = vadd.xlane.f32.xlu1 %v2369_v33 }
 0x2a2   :  { %v1864_v36 = vpop.f32.mrf.mxu0 }
 0x2a3   :  { %930 = vadd.xlane.f32.xlu0 %v2373_v35  ;;  %v2386_v40 = vadd.f32 %v1864_v36, %v2259_v25 }
 0x2a4   :  { %v862_v37 = vpop.f32.mrf.mxu0 }
 0x2a5   :  { %v2381_v38 = vadd.f32 %v2259_v25, %v862_v37 }
 0x2a7   :  { %932 = vadd.xlane.f32.xlu1 %v2381_v38  ;;  %934 = vadd.xlane.f32.xlu0 %v2378_v16 }
 0x2ab   :  { %936 = vadd.xlane.f32.xlu1 %v2386_v40 }
 0x2f2   :  { %v879_v42 = vpop.xlane.xlu1 %878 }
 0x2f3   :  { %v941_v43 = vmul.f32 0.0078125, %v879_v42 }
 0x2f4   :  { %v875_v45 = vpop.xlane.xlu0 %874 }
 0x2f5   :  { %v2390_v47 = vsub.f32 %v2262_v41, %v941_v43  ;;  %v939_v48 = vmul.f32 0.0078125, %v875_v45 }
 0x2f6   :  { %v881_v39 = vpop.xlane.xlu1 %880 }
 0x2f7   :  { %v2393_v2 = vsub.f32 %v2265_v53, %v939_v48  ;;  %v942_v52 = vmul.f32 0.0078125, %v881_v39  ;;  %v1005_v55 = vmul.f32 %v2390_v47, %v2390_v47 }
 0x2f8   :  { %v877_v57 = vpop.xlane.xlu0 %876 }
 0x2f9   :  { %v2398_v25 = vsub.f32 %v2269_v44, %v942_v52  ;;  %v940_v59 = vmul.f32 0.0078125, %v877_v57  ;;  %1039 = vadd.xlane.f32.xlu0 %v1005_v55  ;;  %v1003_v53 = vmul.f32 %v2393_v2, %v2393_v2 }
 0x2fb   :  { %v2401_v61 = vsub.f32 %v2273_v46, %v940_v59  ;;  %v1006_v41 = vmul.f32 %v2398_v25, %v2398_v25 }
 0x2fc   :  { %v887_v63 = vpop.xlane.xlu0 %886 }
 0x2fd   :  { %v945_v4 = vmul.f32 0.0078125, %v887_v63  ;;  %1041 = vadd.xlane.f32.xlu1 %v1006_v41  ;;  %1035 = vadd.xlane.f32.xlu0 %v1003_v53  ;;  %v1004_v10 = vmul.f32 %v2401_v61, %v2401_v61 }
 0x2fe   :  { %v889_v5 = vpop.xlane.xlu1 %888 }
 0x2ff   :  { %v2408_v8 = vsub.f32 %v2278_v49, %v945_v4  ;;  %v946_v44 = vmul.f32 0.0078125, %v889_v5 }
 0x300   :  { %v883_v46 = vpop.xlane.xlu0 %882 }
 0x301   :  { %v2413_v12 = vsub.f32 %v2281_v50, %v946_v44  ;;  %v943_v14 = vmul.f32 0.0078125, %v883_v46  ;;  %1037 = vadd.xlane.f32.xlu1 %v1004_v10  ;;  %v1009_v17 = vmul.f32 %v2408_v8, %v2408_v8 }
 0x302   :  { %v885_v19 = vpop.xlane.xlu1 %884 }
 0x303   :  { %v2418_v22 = vsub.f32 %v2285_v51, %v943_v14  ;;  %v944_v24 = vmul.f32 0.0078125, %v885_v19  ;;  %1047 = vadd.xlane.f32.xlu0 %v1009_v17  ;;  %v1010_v49 = vmul.f32 %v2413_v12, %v2413_v12 }
 0x304   :  { %v895_v26 = vpop.xlane.xlu0 %894 }
 0x305   :  { %v2423_v0 = vsub.f32 %v2289_v54, %v944_v24  ;;  %v949_v50 = vmul.f32 0.0078125, %v895_v26  ;;  %1049 = vadd.xlane.f32.xlu1 %v1010_v49  ;;  %v1007_v28 = vmul.f32 %v2418_v22, %v2418_v22 }
 0x306   :  { %v897_v30 = vpop.xlane.xlu1 %896 }
 0x307   :  { %v2428_v32 = vsub.f32 %v2293_v56, %v949_v50  ;;  %v950_v51 = vmul.f32 0.0078125, %v897_v30  ;;  %1043 = vadd.xlane.f32.xlu0 %v1007_v28  ;;  %v1008_v34 = vmul.f32 %v2423_v0, %v2423_v0 }
 0x308   :  { %v891_v36 = vpop.xlane.xlu0 %890 }
 0x309   :  { %v2433_v37 = vsub.f32 %v2297_v58, %v950_v51  ;;  %v947_v54 = vmul.f32 0.0078125, %v891_v36  ;;  %1045 = vadd.xlane.f32.xlu1 %v1008_v34  ;;  %v1013_v42 = vmul.f32 %v2428_v32, %v2428_v32 }
 0x30a   :  { %v893_v43 = vpop.xlane.xlu1 %892 }
 0x30b   :  { %v2438_v45 = vsub.f32 %v2301_v60, %v947_v54  ;;  %v948_v56 = vmul.f32 0.0078125, %v893_v43  ;;  %1055 = vadd.xlane.f32.xlu0 %v1013_v42  ;;  %v1014_v48 = vmul.f32 %v2433_v37, %v2433_v37 }
 0x30c   :  { %v903_v39 = vpop.xlane.xlu0 %902 }
 0x30d   :  { %v2443_v52 = vsub.f32 %v2305_v62, %v948_v56  ;;  %v953_v58 = vmul.f32 0.0078125, %v903_v39  ;;  %1057 = vadd.xlane.f32.xlu1 %v1014_v48  ;;  %v1011_v55 = vmul.f32 %v2438_v45, %v2438_v45 }
 0x30e   :  { %v905_v57 = vpop.xlane.xlu1 %904 }
 0x30f   :  { %v2448_v59 = vsub.f32 %v2309_v1, %v953_v58  ;;  %v954_v60 = vmul.f32 0.0078125, %v905_v57  ;;  %1051 = vadd.xlane.f32.xlu0 %v1011_v55  ;;  %v1012_v41 = vmul.f32 %v2443_v52, %v2443_v52 }
 0x310   :  { %v899_v53 = vpop.xlane.xlu0 %898 }
 0x311   :  { %v2453_v63 = vsub.f32 %v2313_v3, %v954_v60  ;;  %v951_v62 = vmul.f32 0.0078125, %v899_v53  ;;  %1053 = vadd.xlane.f32.xlu1 %v1012_v41  ;;  %v1017_v4 = vmul.f32 %v2448_v59, %v2448_v59 }
 0x312   :  { %v901_v5 = vpop.xlane.xlu1 %900 }
 0x313   :  { %v2458_v44 = vsub.f32 %v2317_v6, %v951_v62  ;;  %v952_v1 = vmul.f32 0.0078125, %v901_v5  ;;  %1063 = vadd.xlane.f32.xlu0 %v1017_v4  ;;  %v1018_v10 = vmul.f32 %v2453_v63, %v2453_v63 }
 0x314   :  { %v911_v46 = vpop.xlane.xlu0 %910 }
 0x315   :  { %v2463_v14 = vsub.f32 %v2321_v9, %v952_v1  ;;  %v957_v3 = vmul.f32 0.0078125, %v911_v46  ;;  %1065 = vadd.xlane.f32.xlu1 %v1018_v10  ;;  %v1015_v17 = vmul.f32 %v2458_v44, %v2458_v44 }
 0x316   :  { %v913_v19 = vpop.xlane.xlu1 %912 }
 0x317   :  { %v2468_v24 = vsub.f32 %v2325_v11, %v957_v3  ;;  %v958_v6 = vmul.f32 0.0078125, %v913_v19  ;;  %1059 = vadd.xlane.f32.xlu0 %v1015_v17  ;;  %v1016_v49 = vmul.f32 %v2463_v14, %v2463_v14 }
 0x318   :  { %v907_v26 = vpop.xlane.xlu0 %906 }
 0x319   :  { %v2473_v50 = vsub.f32 %v2329_v13, %v958_v6  ;;  %v955_v9 = vmul.f32 0.0078125, %v907_v26  ;;  %1061 = vadd.xlane.f32.xlu1 %v1016_v49  ;;  %v1021_v28 = vmul.f32 %v2468_v24, %v2468_v24 }
 0x31a   :  { %v909_v30 = vpop.xlane.xlu1 %908 }
 0x31b   :  { %v2478_v51 = vsub.f32 %v2333_v15, %v955_v9  ;;  %v956_v11 = vmul.f32 0.0078125, %v909_v30  ;;  %1071 = vadd.xlane.f32.xlu0 %v1021_v28  ;;  %v1022_v34 = vmul.f32 %v2473_v50, %v2473_v50 }
 0x31c   :  { %v919_v36 = vpop.xlane.xlu0 %918 }
 0x31d   :  { %v2483_v54 = vsub.f32 %v2337_v18, %v956_v11  ;;  %v961_v13 = vmul.f32 0.0078125, %v919_v36  ;;  %1073 = vadd.xlane.f32.xlu1 %v1022_v34  ;;  %v1019_v42 = vmul.f32 %v2478_v51, %v2478_v51 }
 0x31e   :  { %v921_v43 = vpop.xlane.xlu1 %920 }
 0x31f   :  { %v2488_v56 = vsub.f32 %v2341_v21, %v961_v13  ;;  %v962_v15 = vmul.f32 0.0078125, %v921_v43  ;;  %1067 = vadd.xlane.f32.xlu0 %v1019_v42  ;;  %v1020_v48 = vmul.f32 %v2483_v54, %v2483_v54 }
 0x320   :  { %v915_v39 = vpop.xlane.xlu0 %914 }
 0x321   :  { %v2493_v58 = vsub.f32 %v2345_v23, %v962_v15  ;;  %v959_v18 = vmul.f32 0.0078125, %v915_v39  ;;  %1069 = vadd.xlane.f32.xlu1 %v1020_v48  ;;  %v1025_v55 = vmul.f32 %v2488_v56, %v2488_v56 }
 0x322   :  { %v917_v57 = vpop.xlane.xlu1 %916 }
 0x323   :  { %v2498_v60 = vsub.f32 %v2349_v20, %v959_v18  ;;  %v960_v21 = vmul.f32 0.0078125, %v917_v57  ;;  %1079 = vadd.xlane.f32.xlu0 %v1025_v55  ;;  %v1026_v41 = vmul.f32 %v2493_v58, %v2493_v58 }
 0x324   :  { %v927_v53 = vpop.xlane.xlu0 %926 }
 0x325   :  { %v2503_v62 = vsub.f32 %v2353_v27, %v960_v21  ;;  %v965_v23 = vmul.f32 0.0078125, %v927_v53  ;;  %1081 = vadd.xlane.f32.xlu1 %v1026_v41  ;;  %v1023_v4 = vmul.f32 %v2498_v60, %v2498_v60 }
 0x326   :  { %v929_v5 = vpop.xlane.xlu1 %928 }
 0x327   :  { %v2508_v1 = vsub.f32 %v2357_v7, %v965_v23  ;;  %v966_v20 = vmul.f32 0.0078125, %v929_v5  ;;  %1075 = vadd.xlane.f32.xlu0 %v1023_v4  ;;  %v1024_v10 = vmul.f32 %v2503_v62, %v2503_v62 }
 0x328   :  { %v923_v46 = vpop.xlane.xlu0 %922 }
 0x329   :  { %v2513_v3 = vsub.f32 %v2361_v29, %v966_v20  ;;  %v963_v27 = vmul.f32 0.0078125, %v923_v46  ;;  %1077 = vadd.xlane.f32.xlu1 %v1024_v10  ;;  %v1029_v17 = vmul.f32 %v2508_v1, %v2508_v1 }
 0x32a   :  { %v925_v19 = vpop.xlane.xlu1 %924 }
 0x32b   :  { %v2518_v6 = vsub.f32 %v2365_v31, %v963_v27  ;;  %v964_v7 = vmul.f32 0.0078125, %v925_v19  ;;  %1087 = vadd.xlane.f32.xlu0 %v1029_v17  ;;  %v1030_v49 = vmul.f32 %v2513_v3, %v2513_v3 }
 0x32c   :  { %v931_v26 = vpop.xlane.xlu0 %930 }
 0x32d   :  { %v2523_v9 = vsub.f32 %v2369_v33, %v964_v7  ;;  %v967_v29 = vmul.f32 0.0078125, %v931_v26  ;;  %1089 = vadd.xlane.f32.xlu1 %v1030_v49  ;;  %v1027_v28 = vmul.f32 %v2518_v6, %v2518_v6 }
 0x32f   :  { %v2528_v30 = vsub.f32 %v2373_v35, %v967_v29  ;;  %1083 = vadd.xlane.f32.xlu0 %v1027_v28  ;;  %v1028_v31 = vmul.f32 %v2523_v9, %v2523_v9 }
 0x330   :  { %v933_v11 = vpop.xlane.xlu1 %932  ;;  %v935_v34 = vpop.xlane.xlu0 %934 }
 0x331   :  { %v968_v36 = vmul.f32 0.0078125, %v933_v11  ;;  %v969_v13 = vmul.f32 0.0078125, %v935_v34  ;;  %1085 = vadd.xlane.f32.xlu1 %v1028_v31  ;;  %v1031_v33 = vmul.f32 %v2528_v30, %v2528_v30 }
 0x333   :  { %v2535_v42 = vsub.f32 %v2381_v38, %v968_v36  ;;  %v2538_v43 = vsub.f32 %v2378_v16, %v969_v13  ;;  %1091 = vadd.xlane.f32.xlu0 %v1031_v33  ;;  %v2552_v13 = vld [vmem:[%s2710_s7] ss:$0 sm:$0xff] }
 0x334   :  { %v937_v35 = vpop.xlane.xlu1 %936 }
 0x335   :  { %v970_v15 = vmul.f32 0.0078125, %v937_v35  ;;  %v1032_v48 = vmul.f32 %v2535_v42, %v2535_v42  ;;  %v1033_v39 = vmul.f32 %v2538_v43, %v2538_v43 }
 0x337   :  { %v2545_v18 = vsub.f32 %v2386_v40, %v970_v15  ;;  %1093 = vadd.xlane.f32.xlu1 %v1032_v48  ;;  %1095 = vadd.xlane.f32.xlu0 %v1033_v39 }
 0x339   :  { %v1034_v38 = vmul.f32 %v2545_v18, %v2545_v18 }
 0x33b   :  { %1097 = vadd.xlane.f32.xlu1 %v1034_v38 }
 0x382   :  { %v1040_v16 = vpop.xlane.xlu0 %1039 }
 0x383   :  { %v1101_v55 = vmul.f32 0.0078125, %v1040_v16 }
 0x385   :  { %v1133_v57 = vadd.f32 1e-05, %v1101_v55 }
 0x386   :  { %v1042_v21 = vpop.xlane.xlu1 %1041  ;;  %v1036_v41 = vpop.xlane.xlu0 %1035 }
 0x387   :  { %1887 = vrsqrt.f32 %v1133_v57  ;;  %v1102_v53 = vmul.f32 0.0078125, %v1042_v21  ;;  %v1099_v23 = vmul.f32 0.0078125, %v1036_v41  ;;  %v2559_v41 = vld [vmem:[%s2711_s8] ss:$0 sm:$0xff] }
 0x389   :  { %v1134_v4 = vadd.f32 1e-05, %v1102_v53  ;;  %v1131_v5 = vadd.f32 1e-05, %v1099_v23 }
 0x38a   :  { %v1038_v20 = vpop.xlane.xlu1 %1037 }
 0x38b   :  { %1889 = vrsqrt.f32 %v1134_v4  ;;  %v1100_v40 = vmul.f32 0.0078125, %v1038_v20 }
 0x38c   :  { %1891 = vrsqrt.f32 %v1131_v5  ;;  %v1048_v10 = vpop.xlane.xlu0 %1047 }
 0x38d   :  { %v1132_v46 = vadd.f32 1e-05, %v1100_v40  ;;  %v1105_v27 = vmul.f32 0.0078125, %v1048_v10 }
 0x38e   :  { %v1050_v17 = vpop.xlane.xlu1 %1049 }
 0x38f   :  { %1893 = vrsqrt.f32 %v1132_v46  ;;  %v1137_v19 = vadd.f32 1e-05, %v1105_v27  ;;  %v1106_v7 = vmul.f32 0.0078125, %v1050_v17 }
 0x390   :  { %v1044_v49 = vpop.xlane.xlu0 %1043 }
 0x391   :  { %1895 = vrsqrt.f32 %v1137_v19  ;;  %v1138_v26 = vadd.f32 1e-05, %v1106_v7  ;;  %v1103_v29 = vmul.f32 0.0078125, %v1044_v49 }
 0x392   :  { %v1046_v28 = vpop.xlane.xlu1 %1045 }
 0x393   :  { %1897 = vrsqrt.f32 %v1138_v26  ;;  %v1135_v31 = vadd.f32 1e-05, %v1103_v29  ;;  %v1104_v11 = vmul.f32 0.0078125, %v1046_v28 }
 0x394   :  { %v1888_v34 = vpop.eup %1887  ;;  %v1056_v36 = vpop.xlane.xlu0 %1055 }
 0x395   :  { %v1197_v33 = vmul.f32 %v1888_v34, %v2390_v47  ;;  %1899 = vrsqrt.f32 %v1135_v31  ;;  %v1136_v35 = vadd.f32 1e-05, %v1104_v11  ;;  %v1109_v15 = vmul.f32 0.0078125, %v1056_v36 }
 0x396   :  { %v1058_v48 = vpop.xlane.xlu1 %1057 }
 0x397   :  { %1901 = vrsqrt.f32 %v1136_v35  ;;  %v1141_v39 = vadd.f32 1e-05, %v1109_v15  ;;  %v1110_v38 = vmul.f32 0.0078125, %v1058_v48  ;;  %v1236_v55 = vmul.f32 %v2552_v13, %v1197_v33 }
 0x398   :  { %v1890_v16 = vpop.eup %1889  ;;  %v1052_v57 = vpop.xlane.xlu0 %1051 }
 0x399   :  { %v1892_v21 = vpop.eup %1891  ;;  %v1198_v53 = vmul.f32 %v1890_v16, %v2398_v25  ;;  %1903 = vrsqrt.f32 %v1141_v39  ;;  %v1142_v47 = vadd.f32 1e-05, %v1110_v38  ;;  %v1107_v4 = vmul.f32 0.0078125, %v1052_v57 }
 0x39a   :  { %v1195_v23 = vmul.f32 %v1892_v21, %v2393_v2  ;;  %v1054_v5 = vpop.xlane.xlu1 %1053  ;;  %v1275_v46 = vadd.f32 %v2559_v41, %v1236_v55 }
 0x39b   :  { %v1237_v20 = vmul.f32 %v2552_v13, %v1198_v53  ;;  %1905 = vrsqrt.f32 %v1142_v47  ;;  %v1108_v40 = vmul.f32 0.0078125, %v1054_v5  ;;  %v1139_v17 = vadd.f32 1e-05, %v1107_v4 }
 0x39c   :  { %v1894_v10 = vpop.eup %1893  ;;  %v1234_v27 = vmul.f32 %v2552_v13, %v1195_v23  ;;  %v1064_v19 = vpop.xlane.xlu0 %1063 }
 0x39d   :  { %v1276_v7 = vadd.f32 %v2559_v41, %v1237_v20  ;;  %v1196_v25 = vmul.f32 %v1894_v10, %v2401_v61  ;;  %v1140_v49 = vadd.f32 1e-05, %v1108_v40  ;;  %v1113_v26 = vmul.f32 0.0078125, %v1064_v19 }
 0x39e   :  { %v1896_v2 = vpop.eup %1895  ;;  %1907 = vrsqrt.f32 %v1139_v17  ;;  %v1066_v29 = vpop.xlane.xlu1 %1065  ;;  %v1273_v36 = vadd.f32 %v2559_v41, %v1234_v27 }
 0x39f   :  { %v1580_v28 = vpack.c.bf16 %v1276_v7, %v1275_v46  ;;  %v1235_v31 = vmul.f32 %v2552_v13, %v1196_v25  ;;  %v1201_v11 = vmul.f32 %v1896_v2, %v2408_v8  ;;  %1909 = vrsqrt.f32 %v1140_v49 }
 0x3a0   :  { %v1898_v34 = vpop.eup %1897  ;;  %v1145_v33 = vadd.f32 1e-05, %v1113_v26  ;;  %v1114_v35 = vmul.f32 0.0078125, %v1066_v29  ;;  %v1060_v15 = vpop.xlane.xlu0 %1059 }
 0x3a1   :  { %1652 = vst [vmem:[%s2712_s9 + $0x8] sm:$0xff] %v1580_v28   ;;  %v1274_v61 = vadd.f32 %v2559_v41, %v1235_v31  ;;  %v1240_v48 = vmul.f32 %v2552_v13, %v1201_v11  ;;  %v1202_v39 = vmul.f32 %v1898_v34, %v2413_v12  ;;  %v1111_v38 = vmul.f32 0.0078125, %v1060_v15 }
 0x3a2   :  { %v1900_v16 = vpop.eup %1899  ;;  %1911 = vrsqrt.f32 %v1145_v33  ;;  %v1146_v8 = vadd.f32 1e-05, %v1114_v35  ;;  %v1062_v55 = vpop.xlane.xlu1 %1061 }
 0x3a3   :  { %v1575_v57 = vpack.c.bf16 %v1274_v61, %v1273_v36  ;;  %v1241_v21 = vmul.f32 %v2552_v13, %v1202_v39  ;;  %v1199_v53 = vmul.f32 %v1900_v16, %v2418_v22  ;;  %v1279_v23 = vadd.f32 %v2559_v41, %v1240_v48 }
 0x3a4   :  { %v1902_v47 = vpop.eup %1901  ;;  %1913 = vrsqrt.f32 %v1146_v8  ;;  %v1143_v4 = vadd.f32 1e-05, %v1111_v38  ;;  %v1112_v5 = vmul.f32 0.0078125, %v1062_v55  ;;  %v1072_v20 = vpop.xlane.xlu0 %1071 }
 0x3a5   :  { %1576 = vst [vmem:[%s2712_s9] sm:$0xff] %v1575_v57   ;;  %v1280_v12 = vadd.f32 %v2559_v41, %v1241_v21  ;;  %v1238_v40 = vmul.f32 %v2552_v13, %v1199_v53  ;;  %v1200_v10 = vmul.f32 %v1902_v47, %v2423_v0  ;;  %v1117_v46 = vmul.f32 0.0078125, %v1072_v20 }
 0x3a6   :  { %v1904_v27 = vpop.eup %1903  ;;  %1915 = vrsqrt.f32 %v1143_v4  ;;  %v1144_v22 = vadd.f32 1e-05, %v1112_v5  ;;  %v1074_v17 = vpop.xlane.xlu1 %1073 }
 0x3a7   :  { %v1590_v19 = vpack.c.bf16 %v1280_v12, %v1279_v23  ;;  %v1239_v7 = vmul.f32 %v2552_v13, %v1200_v10  ;;  %v1205_v25 = vmul.f32 %v1904_v27, %v2428_v32  ;;  %v1277_v26 = vadd.f32 %v2559_v41, %v1238_v40 }
 0x3a8   :  { %v1906_v49 = vpop.eup %1905  ;;  %1917 = vrsqrt.f32 %v1144_v22  ;;  %v1149_v2 = vadd.f32 1e-05, %v1117_v46  ;;  %v1118_v29 = vmul.f32 0.0078125, %v1074_v17  ;;  %v1068_v28 = vpop.xlane.xlu0 %1067 }
 0x3a9   :  { %1654 = vst [vmem:[%s2712_s9 + $0x18] sm:$0xff] %v1590_v19   ;;  %v1278_v0 = vadd.f32 %v2559_v41, %v1239_v7  ;;  %v1244_v31 = vmul.f32 %v2552_v13, %v1205_v25  ;;  %v1206_v11 = vmul.f32 %v1906_v49, %v2433_v37  ;;  %v1115_v34 = vmul.f32 0.0078125, %v1068_v28 }
 0x3aa   :  { %1919 = vrsqrt.f32 %v1149_v2  ;;  %v1150_v32 = vadd.f32 1e-05, %v1118_v29  ;;  %v1070_v36 = vpop.xlane.xlu1 %1069 }
 0x3ab   :  { %v1908_v33 = vpop.eup %1907  ;;  %v1585_v35 = vpack.c.bf16 %v1278_v0, %v1277_v26  ;;  %v1245_v15 = vmul.f32 %v2552_v13, %v1206_v11  ;;  %v1147_v61 = vadd.f32 1e-05, %v1115_v34  ;;  %v1283_v39 = vadd.f32 %v2559_v41, %v1244_v31 }
 0x3ac   :  { %v1910_v48 = vpop.eup %1909  ;;  %v1203_v38 = vmul.f32 %v1908_v33, %v2438_v45  ;;  %1921 = vrsqrt.f32 %v1150_v32  ;;  %v1116_v16 = vmul.f32 0.0078125, %v1070_v36  ;;  %v1080_v8 = vpop.xlane.xlu0 %1079 }
 0x3ad   :  { %1653 = vst [vmem:[%s2712_s9 + $0x10] sm:$0xff] %v1585_v35   ;;  %v1284_v37 = vadd.f32 %v2559_v41, %v1245_v15  ;;  %v1204_v55 = vmul.f32 %v1910_v48, %v2443_v52  ;;  %1923 = vrsqrt.f32 %v1147_v61  ;;  %v1121_v57 = vmul.f32 0.0078125, %v1080_v8 }
 0x3ae   :  { %v1242_v21 = vmul.f32 %v2552_v13, %v1203_v38  ;;  %v1148_v53 = vadd.f32 1e-05, %v1116_v16  ;;  %v1082_v47 = vpop.xlane.xlu1 %1081 }
 0x3af   :  { %v1912_v23 = vpop.eup %1911  ;;  %v1600_v4 = vpack.c.bf16 %v1284_v37, %v1283_v39  ;;  %v1243_v45 = vmul.f32 %v2552_v13, %v1204_v55  ;;  %v1153_v5 = vadd.f32 1e-05, %v1121_v57  ;;  %v1122_v20 = vmul.f32 0.0078125, %v1082_v47 }
 0x3b0   :  { %v1281_v12 = vadd.f32 %v2559_v41, %v1242_v21  ;;  %v1209_v40 = vmul.f32 %v1912_v23, %v2448_v59  ;;  %1925 = vrsqrt.f32 %v1148_v53  ;;  %v1076_v10 = vpop.xlane.xlu0 %1075 }
 0x3b1   :  { %v1914_v46 = vpop.eup %1913  ;;  %1656 = vst [vmem:[%s2712_s9 + $0x28] sm:$0xff] %v1600_v4   ;;  %v1282_v52 = vadd.f32 %v2559_v41, %v1243_v45  ;;  %1927 = vrsqrt.f32 %v1153_v5  ;;  %v1154_v27 = vadd.f32 1e-05, %v1122_v20  ;;  %v1119_v22 = vmul.f32 0.0078125, %v1076_v10 }
 0x3b2   :  { %v1248_v17 = vmul.f32 %v2552_v13, %v1209_v40  ;;  %v1210_v19 = vmul.f32 %v1914_v46, %v2453_v63  ;;  %v1078_v7 = vpop.xlane.xlu1 %1077 }
 0x3b3   :  { %v1916_v25 = vpop.eup %1915  ;;  %v1595_v49 = vpack.c.bf16 %v1282_v52, %v1281_v12  ;;  %1929 = vrsqrt.f32 %v1154_v27  ;;  %v1151_v59 = vadd.f32 1e-05, %v1119_v22  ;;  %v1120_v26 = vmul.f32 0.0078125, %v1078_v7 }
 0x3b4   :  { %v1249_v2 = vmul.f32 %v2552_v13, %v1210_v19  ;;  %v1207_v29 = vmul.f32 %v1916_v25, %v2458_v44  ;;  %v1088_v28 = vpop.xlane.xlu0 %1087  ;;  %v1287_v63 = vadd.f32 %v2559_v41, %v1248_v17 }
 0x3b5   :  { %v1918_v0 = vpop.eup %1917  ;;  %1655 = vst [vmem:[%s2712_s9 + $0x20] sm:$0xff] %v1595_v49   ;;  %1931 = vrsqrt.f32 %v1151_v59  ;;  %v1152_v31 = vadd.f32 1e-05, %v1120_v26  ;;  %v1125_v11 = vmul.f32 0.0078125, %v1088_v28 }
 0x3b6   :  { %v1288_v34 = vadd.f32 %v2559_v41, %v1249_v2  ;;  %v1246_v32 = vmul.f32 %v2552_v13, %v1207_v29  ;;  %v1208_v36 = vmul.f32 %v1918_v0, %v2463_v14  ;;  %v1090_v33 = vpop.xlane.xlu1 %1089 }
 0x3b7   :  { %v1920_v35 = vpop.eup %1919  ;;  %1933 = vrsqrt.f32 %v1152_v31  ;;  %v1157_v44 = vadd.f32 1e-05, %v1125_v11  ;;  %v1126_v15 = vmul.f32 0.0078125, %v1090_v33 }
 0x3b8   :  { %v1610_v61 = vpack.c.bf16 %v1288_v34, %v1287_v63  ;;  %v1247_v48 = vmul.f32 %v2552_v13, %v1208_v36  ;;  %v1213_v39 = vmul.f32 %v1920_v35, %v2468_v24  ;;  %v1084_v38 = vpop.xlane.xlu0 %1083  ;;  %v1285_v14 = vadd.f32 %v2559_v41, %v1246_v32 }
 0x3b9   :  { %v1922_v16 = vpop.eup %1921  ;;  %1935 = vrsqrt.f32 %v1157_v44  ;;  %v1158_v8 = vadd.f32 1e-05, %v1126_v15  ;;  %v1123_v37 = vmul.f32 0.0078125, %v1084_v38 }
 0x3ba   :  { %v1924_v55 = vpop.eup %1923  ;;  %1658 = vst [vmem:[%s2712_s9 + $0x38] sm:$0xff] %v1610_v61   ;;  %v1286_v57 = vadd.f32 %v2559_v41, %v1247_v48  ;;  %v1252_v21 = vmul.f32 %v2552_v13, %v1213_v39  ;;  %v1214_v53 = vmul.f32 %v1922_v16, %v2473_v50  ;;  %v1086_v47 = vpop.xlane.xlu1 %1085 }
 0x3bb   :  { %v1211_v24 = vmul.f32 %v1924_v55, %v2478_v51  ;;  %1937 = vrsqrt.f32 %v1158_v8  ;;  %v1155_v23 = vadd.f32 1e-05, %v1123_v37  ;;  %v1124_v4 = vmul.f32 0.0078125, %v1086_v47 }
 0x3bc   :  { %v1605_v45 = vpack.c.bf16 %v1286_v57, %v1285_v14  ;;  %v1253_v5 = vmul.f32 %v2552_v13, %v1214_v53  ;;  %v1092_v20 = vpop.xlane.xlu0 %1091  ;;  %v1291_v50 = vadd.f32 %v2559_v41, %v1252_v21 }
 0x3bd   :  { %v1926_v12 = vpop.eup %1925  ;;  %1939 = vrsqrt.f32 %v1155_v23  ;;  %v1156_v40 = vadd.f32 1e-05, %v1124_v4  ;;  %v1127_v10 = vmul.f32 0.0078125, %v1092_v20  ;;  %v1250_v52 = vmul.f32 %v2552_v13, %v1211_v24 }
 0x3be   :  { %v1928_v46 = vpop.eup %1927  ;;  %1657 = vst [vmem:[%s2712_s9 + $0x30] sm:$0xff] %v1605_v45   ;;  %v1292_v51 = vadd.f32 %v2559_v41, %v1253_v5  ;;  %v1212_v27 = vmul.f32 %v1926_v12, %v2483_v54 }
 0x3bf   :  { %v1217_v22 = vmul.f32 %v1928_v46, %v2488_v56  ;;  %1941 = vrsqrt.f32 %v1156_v40  ;;  %v1159_v17 = vadd.f32 1e-05, %v1127_v10  ;;  %v1289_v54 = vadd.f32 %v2559_v41, %v1250_v52 }
 0x3c0   :  { %v1930_v19 = vpop.eup %1929  ;;  %v1620_v7 = vpack.c.bf16 %v1292_v51, %v1291_v50  ;;  %v1251_v25 = vmul.f32 %v2552_v13, %v1212_v27  ;;  %v1094_v49 = vpop.xlane.xlu1 %1093 }
 0x3c1   :  { %v1096_v59 = vpop.xlane.xlu0 %1095  ;;  %v1256_v26 = vmul.f32 %v2552_v13, %v1217_v22  ;;  %v1218_v2 = vmul.f32 %v1930_v19, %v2493_v58  ;;  %1943 = vrsqrt.f32 %v1159_v17  ;;  %v1128_v29 = vmul.f32 0.0078125, %v1094_v49 }
 0x3c2   :  { %v1932_v28 = vpop.eup %1931  ;;  %1660 = vst [vmem:[%s2712_s9 + $0x48] sm:$0xff] %v1620_v7   ;;  %v1290_v56 = vadd.f32 %v2559_v41, %v1251_v25  ;;  %v1129_v0 = vmul.f32 0.0078125, %v1096_v59 }
 0x3c3   :  { %v1257_v31 = vmul.f32 %v2552_v13, %v1218_v2  ;;  %v1215_v11 = vmul.f32 %v1932_v28, %v2498_v60  ;;  %v1160_v63 = vadd.f32 1e-05, %v1128_v29  ;;  %v1295_v58 = vadd.f32 %v2559_v41, %v1256_v26 }
 0x3c4   :  { %v1934_v34 = vpop.eup %1933  ;;  %v1615_v32 = vpack.c.bf16 %v1290_v56, %v1289_v54  ;;  %v1161_v36 = vadd.f32 1e-05, %v1129_v0  ;;  %v1098_v33 = vpop.xlane.xlu1 %1097 }
 0x3c5   :  { %v1296_v35 = vadd.f32 %v2559_v41, %v1257_v31  ;;  %v1254_v44 = vmul.f32 %v2552_v13, %v1215_v11  ;;  %v1216_v15 = vmul.f32 %v1934_v34, %v2503_v62  ;;  %1945 = vrsqrt.f32 %v1160_v63 }
 0x3c6   :  { %v1936_v61 = vpop.eup %1935  ;;  %1659 = vst [vmem:[%s2712_s9 + $0x40] sm:$0xff] %v1615_v32   ;;  %1947 = vrsqrt.f32 %v1161_v36  ;;  %v1130_v60 = vmul.f32 0.0078125, %v1098_v33 }
 0x3c7   :  { %v1630_v48 = vpack.c.bf16 %v1296_v35, %v1295_v58  ;;  %v1255_v39 = vmul.f32 %v2552_v13, %v1216_v15  ;;  %v1221_v38 = vmul.f32 %v1936_v61, %v2508_v1  ;;  %v1293_v62 = vadd.f32 %v2559_v41, %v1254_v44 }
 0x3c8   :  { %v1938_v16 = vpop.eup %1937  ;;  %v1162_v8 = vadd.f32 1e-05, %v1130_v60 }
 0x3c9   :  { %1662 = vst [vmem:[%s2712_s9 + $0x58] sm:$0xff] %v1630_v48   ;;  %v1294_v37 = vadd.f32 %v2559_v41, %v1255_v39  ;;  %v1260_v55 = vmul.f32 %v2552_v13, %v1221_v38  ;;  %v1222_v14 = vmul.f32 %v1938_v16, %v2513_v3 }
 0x3ca   :  { %v1940_v57 = vpop.eup %1939  ;;  %1949 = vrsqrt.f32 %v1162_v8 }
 0x3cb   :  { %v1625_v21 = vpack.c.bf16 %v1294_v37, %v1293_v62  ;;  %v1261_v53 = vmul.f32 %v2552_v13, %v1222_v14  ;;  %v1219_v1 = vmul.f32 %v1940_v57, %v2518_v6  ;;  %v1299_v24 = vadd.f32 %v2559_v41, %v1260_v55 }
 0x3cc   :  { %v1942_v47 = vpop.eup %1941 }
 0x3cd   :  { %1661 = vst [vmem:[%s2712_s9 + $0x50] sm:$0xff] %v1625_v21   ;;  %v1300_v23 = vadd.f32 %v2559_v41, %v1261_v53  ;;  %v1258_v4 = vmul.f32 %v2552_v13, %v1219_v1  ;;  %v1220_v3 = vmul.f32 %v1942_v47, %v2523_v9 }
 0x3ce   :  { %v1944_v45 = vpop.eup %1943 }
 0x3cf   :  { %v1640_v5 = vpack.c.bf16 %v1300_v23, %v1299_v24  ;;  %v1259_v20 = vmul.f32 %v2552_v13, %v1220_v3  ;;  %v1223_v12 = vmul.f32 %v1944_v45, %v2528_v30  ;;  %v1297_v6 = vadd.f32 %v2559_v41, %v1258_v4 }
 0x3d1   :  { %1664 = vst [vmem:[%s2712_s9 + $0x68] sm:$0xff] %v1640_v5   ;;  %v1298_v40 = vadd.f32 %v2559_v41, %v1259_v20  ;;  %v1262_v51 = vmul.f32 %v2552_v13, %v1223_v12 }
 0x3d2   :  { %v1946_v10 = vpop.eup %1945 }
 0x3d3   :  { %v1948_v46 = vpop.eup %1947  ;;  %v1635_v50 = vpack.c.bf16 %v1298_v40, %v1297_v6  ;;  %v1224_v9 = vmul.f32 %v1946_v10, %v2535_v42  ;;  %v1301_v22 = vadd.f32 %v2559_v41, %v1262_v51 }
 0x3d4   :  { %v1225_v52 = vmul.f32 %v1948_v46, %v2538_v43 }
 0x3d5   :  { %1663 = vst [vmem:[%s2712_s9 + $0x60] sm:$0xff] %v1635_v50   ;;  %v1263_v30 = vmul.f32 %v2552_v13, %v1224_v9 }
 0x3d6   :  { %v1264_v19 = vmul.f32 %v2552_v13, %v1225_v52 }
 0x3d7   :  { %v1950_v27 = vpop.eup %1949  ;;  %v1302_v17 = vadd.f32 %v2559_v41, %v1263_v30 }
 0x3d8   :  { %v1226_v7 = vmul.f32 %v1950_v27, %v2545_v18  ;;  %v1303_v43 = vadd.f32 %v2559_v41, %v1264_v19 }
 0x3d9   :  { %v1645_v25 = vpack.c.bf16 %v1302_v17, %v1301_v22 }
 0x3da   :  { %v1265_v42 = vmul.f32 %v2552_v13, %v1226_v7 }
 0x3db   :  { %1665 = vst [vmem:[%s2712_s9 + $0x70] sm:$0xff] %v1645_v25  }
 0x3dc   :  { %v1304_v49 = vadd.f32 %v2559_v41, %v1265_v42 }
 0x3de   :  { %v1650_v59 = vpack.c.bf16 %v1304_v49, %v1303_v43 }
 0x3e0   :  { %1666 = vst [vmem:[%s2712_s9 + $0x78] sm:$0xff] %v1650_v59  }

</bundles_post_ra>
